<compile_context>
chip_gen: v6e
topology: v6e:2x2x1
jax: 0.10.0
libtpu: 0.0.40
codegen_flags: <defaults>
</compile_context>

<pallas_src>
import jax
import jax.numpy as jnp
from jax import lax
from jax.experimental import pallas as pl
from jax.experimental.pallas import tpu as pltpu

_LANE = 128          # images per lane group
_MAX_SUB = 8         # sublane-group tile (images / 128) per grid step


def _cnn_kernel(x_ref, w1_ref, b1_ref, w2_ref, b2_ref, w3_ref, b3_ref,
                o_ref, a1_ref, a2_ref):
    # x_ref:  (H,  W,  tb_sub, 128) f32 block — batch on (sublane, lane).
    # a1_ref: (H-2,W-2,tb_sub, 128) VMEM scratch (layer-1 output)
    # a2_ref: (H-4,W-4,tb_sub, 128) VMEM scratch (layer-2 output)
    # o_ref:  (H-5,W-5,tb_sub, 128)
    tb_sub, lane = x_ref.shape[2], x_ref.shape[3]

    def conv_layer(src_ref, dst_ref, w_ref, b_ref, k):
        hin, win = src_ref.shape[0], src_ref.shape[1]
        hout, wout = hin - k + 1, win - k + 1

        # Hoist scalar->vreg broadcasts out of the row loop (no CSE for
        # broadcast_in_dim); these stay loop-invariant in registers.
        wb = [jnp.full((tb_sub, lane), w_ref[t], jnp.float32)
              for t in range(k * k)]
        bb = jnp.full((tb_sub, lane), b_ref[0], jnp.float32)

        def row_body(r, carry):
            # Register-resident accumulator for ONE output row: wout vregs.
            acc = None
            for i in range(k):                 # unrolled kxk tap loop
                # Load the i-th input row of this strip once, reuse it for all
                # k column taps (slide the window instead of re-loading).
                row = src_ref[r + i]           # (win, tb_sub, lane)
                for j in range(k):
                    term = wb[i * k + j] * row[j:j + wout]
                    if i == 0 and j == 0:
                        acc = bb + term        # bias folded into first tap
                    else:
                        acc = acc + term
            dst_ref[r] = acc                   # single store per output row
            return carry

        lax.fori_loop(0, hout, row_body, 0, unroll=False)

    conv_layer(x_ref,  a1_ref, w1_ref, b1_ref, 3)   # (H-2, W-2, ...)
    conv_layer(a1_ref, a2_ref, w2_ref, b2_ref, 3)   # (H-4, W-4, ...)
    conv_layer(a2_ref, o_ref,  w3_ref, b3_ref, 2)   # (H-5, W-5, ...)


def cnn_forward(x, w1, b1, w2, b2, w3, b3):
    """x: (B, 1, H, W) float32 (NCHW). Returns (B, 1, H-5, W-5)."""
    B, C, H, W = x.shape
    assert C == 1
    Ho, Wo = H - 5, W - 5

    # Batch block sized from the real batch: pad only to a multiple of 128
    # lanes; sublane-group tile is min(G, 8) (full-dim exception when G < 8).
    G = pl.cdiv(B, _LANE)                    # number of 128-image lane groups
    if G <= _MAX_SUB:
        tb_sub = G
        Gp = G
    else:
        tb_sub = _MAX_SUB
        Gp = pl.cdiv(G, tb_sub) * tb_sub
    Bp = Gp * _LANE
    nb = Gp // tb_sub                        # grid steps ("parallel")

    x_sq = x.reshape(B, H, W).astype(jnp.float32)
    x_pad = jnp.pad(x_sq, ((0, Bp - B), (0, 0), (0, 0)))
    # (H, W, Bp) lane-dense layout, batch split into (group, 128) tiles.
    x_t = jnp.transpose(x_pad, (1, 2, 0)).reshape(H, W, Gp, _LANE)

    smem = pl.BlockSpec(memory_space=pltpu.MemorySpace.SMEM)

    out = pl.pallas_call(
        _cnn_kernel,
        out_shape=jax.ShapeDtypeStruct((Ho, Wo, Gp, _LANE), jnp.float32),
        grid=(nb,),
        in_specs=[
            pl.BlockSpec((H, W, tb_sub, _LANE), lambda b: (0, 0, b, 0)),
            smem, smem,   # w1 (9,), b1 (1,)
            smem, smem,   # w2 (9,), b2 (1,)
            smem, smem,   # w3 (4,), b3 (1,)
        ],
        out_specs=pl.BlockSpec((Ho, Wo, tb_sub, _LANE),
                               lambda b: (0, 0, b, 0)),
        scratch_shapes=[
            pltpu.VMEM((H - 2, W - 2, tb_sub, _LANE), jnp.float32),
            pltpu.VMEM((H - 4, W - 4, tb_sub, _LANE), jnp.float32),
        ],
        compiler_params=pltpu.CompilerParams(
            dimension_semantics=("parallel",)),
    )(x_t,
      w1.reshape(-1), b1.reshape(-1),
      w2.reshape(-1), b2.reshape(-1),
      w3.reshape(-1), b3.reshape(-1))

    # (Ho, Wo, Bp) -> drop batch padding -> NCHW.
    out = out.reshape(Ho, Wo, Bp)[:, :, :B]
    out = jnp.transpose(out, (2, 0, 1)).reshape(B, 1, Ho, Wo)
    return out


def _reference(x, w1, b1, w2, b2, w3, b3):
    """Pure-JAX reference using lax.conv_general_dilated (PyTorch semantics)."""
    def conv(inp, w, b):
        w4 = w.reshape(1, 1, *w.shape)  # OIHW
        y = lax.conv_general_dilated(
            inp, w4, window_strides=(1, 1), padding="VALID",
            dimension_numbers=("NCHW", "OIHW", "NCHW"))
        return y + b.reshape(1, 1, 1, 1)
    out = conv(x, w1, b1)
    out = conv(out, w2, b2)
    out = conv(out, w3, b3)
    return out


def _init_params(key):
    """Deterministic init mimicking nn.Conv2d default (uniform ±1/sqrt(fan_in))."""
    ks = jax.random.split(key, 6)
    def u(k, shape, fan_in):
        bound = 1.0 / (fan_in ** 0.5)
        return jax.random.uniform(k, shape, jnp.float32, -bound, bound)
    w1 = u(ks[0], (3, 3), 9); b1 = u(ks[1], (1,), 9)
    w2 = u(ks[2], (3, 3), 9); b2 = u(ks[3], (1,), 9)
    w3 = u(ks[4], (2, 2), 4); b3 = u(ks[5], (1,), 4)
    return w1, b1, w2, b2, w3, b3


if __name__ == "__main__":
    key = jax.random.PRNGKey(0)
    k_x, k_x2, k_p = jax.random.split(key, 3)

    w1, b1, w2, b2, w3, b3 = _init_params(k_p)

    # Small-batch check (B=2): single grid step, tb_sub sized from B.
    B, C, H, W = 2, 1, 16, 16
    x = jax.random.normal(k_x, (B, C, H, W), jnp.float32)
    out = cnn_forward(x, w1, b1, w2, b2, w3, b3)
    out = jax.block_until_ready(out)
    ref = _reference(x, w1, b1, w2, b2, w3, b3)
    assert out.shape == (B, 1, H - 5, W - 5), out.shape
    assert jnp.allclose(out, ref, atol=1e-5, rtol=1e-5), "mismatch (B=2)"

    # Multi-block check: exercises tb_sub=8 and a multi-step "parallel" grid.
    B2 = 1536   # G=12 -> Gp=16, 2 grid steps
    x2 = jax.random.normal(k_x2, (B2, C, H, W), jnp.float32)
    out2 = cnn_forward(x2, w1, b1, w2, b2, w3, b3)
    out2 = jax.block_until_ready(out2)
    ref2 = _reference(x2, w1, b1, w2, b2, w3, b3)
    assert out2.shape == (B2, 1, H - 5, W - 5), out2.shape
    assert jnp.allclose(out2, ref2, atol=1e-5, rtol=1e-5), "mismatch (B=1536)"

    print("KERNEL_OK")
</pallas_src>

<mosaic_0001>
module attributes {stable_mosaic.version = 11 : i64} {
  func.func @_cnn_kernel(%arg0: i32, %arg1: memref<16x16x1x128xf32, #tpu.memory_space<vmem>>, %arg2: memref<9xf32, #tpu.memory_space<smem>>, %arg3: memref<1xf32, #tpu.memory_space<smem>>, %arg4: memref<9xf32, #tpu.memory_space<smem>>, %arg5: memref<1xf32, #tpu.memory_space<smem>>, %arg6: memref<4xf32, #tpu.memory_space<smem>>, %arg7: memref<1xf32, #tpu.memory_space<smem>>, %arg8: memref<11x11x1x128xf32, #tpu.memory_space<vmem>>, %arg9: memref<14x14x1x128xf32, #tpu.memory_space<vmem>>, %arg10: memref<12x12x1x128xf32, #tpu.memory_space<vmem>>) attributes {dimension_semantics = [#tpu.dimension_semantics<parallel>], iteration_bounds = array<i64: 1>, scalar_prefetch = 0 : i64, scratch_operands = 2 : i64, tpu.core_type = #tpu.core_type<tc>, window_params = [{transform_indices = @transform_0, window_bounds = array<i64: 16, 16, 1, 128>}, {transform_indices = @transform_1, window_bounds = array<i64: 9>}, {transform_indices = @transform_2, window_bounds = array<i64: 1>}, {transform_indices = @transform_3, window_bounds = array<i64: 9>}, {transform_indices = @transform_4, window_bounds = array<i64: 1>}, {transform_indices = @transform_5, window_bounds = array<i64: 4>}, {transform_indices = @transform_6, window_bounds = array<i64: 1>}, {transform_indices = @transform_7, window_bounds = array<i64: 11, 11, 1, 128>}]} {
    %c0 = arith.constant 0 : index
    %0 = memref.load %arg2[%c0] : memref<9xf32, #tpu.memory_space<smem>>
    %1 = vector.broadcast %0 : f32 to vector<1x128xf32>
    %c1 = arith.constant 1 : index
    %2 = memref.load %arg2[%c1] : memref<9xf32, #tpu.memory_space<smem>>
    %3 = vector.broadcast %2 : f32 to vector<1x128xf32>
    %c2 = arith.constant 2 : index
    %4 = memref.load %arg2[%c2] : memref<9xf32, #tpu.memory_space<smem>>
    %5 = vector.broadcast %4 : f32 to vector<1x128xf32>
    %c3 = arith.constant 3 : index
    %6 = memref.load %arg2[%c3] : memref<9xf32, #tpu.memory_space<smem>>
    %7 = vector.broadcast %6 : f32 to vector<1x128xf32>
    %c4 = arith.constant 4 : index
    %8 = memref.load %arg2[%c4] : memref<9xf32, #tpu.memory_space<smem>>
    %9 = vector.broadcast %8 : f32 to vector<1x128xf32>
    %c5 = arith.constant 5 : index
    %10 = memref.load %arg2[%c5] : memref<9xf32, #tpu.memory_space<smem>>
    %11 = vector.broadcast %10 : f32 to vector<1x128xf32>
    %c6 = arith.constant 6 : index
    %12 = memref.load %arg2[%c6] : memref<9xf32, #tpu.memory_space<smem>>
    %13 = vector.broadcast %12 : f32 to vector<1x128xf32>
    %c7 = arith.constant 7 : index
    %14 = memref.load %arg2[%c7] : memref<9xf32, #tpu.memory_space<smem>>
    %15 = vector.broadcast %14 : f32 to vector<1x128xf32>
    %c8 = arith.constant 8 : index
    %16 = memref.load %arg2[%c8] : memref<9xf32, #tpu.memory_space<smem>>
    %17 = vector.broadcast %16 : f32 to vector<1x128xf32>
    %c0_0 = arith.constant 0 : index
    %18 = memref.load %arg3[%c0_0] : memref<1xf32, #tpu.memory_space<smem>>
    %19 = vector.broadcast %18 : f32 to vector<1x128xf32>
    %c0_i32 = arith.constant 0 : i32
    %c14_i32 = arith.constant 14 : i32
    %20 = arith.addi %c0_i32, %c14_i32 : i32
    %c1_i32 = arith.constant 1 : i32
    scf.for %arg11 = %c0_i32 to %20 step %c1_i32  : i32 {
      %c0_i32_23 = arith.constant 0 : i32
      %53 = arith.addi %arg11, %c0_i32_23 : i32
      %54 = arith.index_cast %53 : i32 to index
      %c0_24 = arith.constant 0 : index
      %c0_25 = arith.constant 0 : index
      %c0_26 = arith.constant 0 : index
      %55 = vector.load %arg1[%54, %c0_24, %c0_25, %c0_26] : memref<16x16x1x128xf32, #tpu.memory_space<vmem>>, vector<1x16x1x128xf32>
      %56 = vector.shape_cast %55 : vector<1x16x1x128xf32> to vector<16x1x128xf32>
      %57 = vector.extract_strided_slice %56 {offsets = [0, 0, 0], sizes = [14, 1, 128], strides = [1, 1, 1]} : vector<16x1x128xf32> to vector<14x1x128xf32>
      %58 = vector.shape_cast %1 : vector<1x128xf32> to vector<1x1x128xf32>
      %59 = vector.broadcast %58 : vector<1x1x128xf32> to vector<14x1x128xf32>
      %60 = arith.mulf %59, %57 : vector<14x1x128xf32>
      %61 = vector.shape_cast %19 : vector<1x128xf32> to vector<1x1x128xf32>
      %62 = vector.broadcast %61 : vector<1x1x128xf32> to vector<14x1x128xf32>
      %63 = arith.addf %62, %60 : vector<14x1x128xf32>
      %64 = vector.extract_strided_slice %56 {offsets = [1, 0, 0], sizes = [14, 1, 128], strides = [1, 1, 1]} : vector<16x1x128xf32> to vector<14x1x128xf32>
      %65 = vector.shape_cast %3 : vector<1x128xf32> to vector<1x1x128xf32>
      %66 = vector.broadcast %65 : vector<1x1x128xf32> to vector<14x1x128xf32>
      %67 = arith.mulf %66, %64 : vector<14x1x128xf32>
      %68 = arith.addf %63, %67 : vector<14x1x128xf32>
      %69 = vector.extract_strided_slice %56 {offsets = [2, 0, 0], sizes = [14, 1, 128], strides = [1, 1, 1]} : vector<16x1x128xf32> to vector<14x1x128xf32>
      %70 = vector.shape_cast %5 : vector<1x128xf32> to vector<1x1x128xf32>
      %71 = vector.broadcast %70 : vector<1x1x128xf32> to vector<14x1x128xf32>
      %72 = arith.mulf %71, %69 : vector<14x1x128xf32>
      %73 = arith.addf %68, %72 : vector<14x1x128xf32>
      %c1_i32_27 = arith.constant 1 : i32
      %74 = arith.addi %arg11, %c1_i32_27 : i32
      %75 = arith.index_cast %74 : i32 to index
      %c0_28 = arith.constant 0 : index
      %c0_29 = arith.constant 0 : index
      %c0_30 = arith.constant 0 : index
      %76 = vector.load %arg1[%75, %c0_28, %c0_29, %c0_30] : memref<16x16x1x128xf32, #tpu.memory_space<vmem>>, vector<1x16x1x128xf32>
      %77 = vector.shape_cast %76 : vector<1x16x1x128xf32> to vector<16x1x128xf32>
      %78 = vector.extract_strided_slice %77 {offsets = [0, 0, 0], sizes = [14, 1, 128], strides = [1, 1, 1]} : vector<16x1x128xf32> to vector<14x1x128xf32>
      %79 = vector.shape_cast %7 : vector<1x128xf32> to vector<1x1x128xf32>
      %80 = vector.broadcast %79 : vector<1x1x128xf32> to vector<14x1x128xf32>
      %81 = arith.mulf %80, %78 : vector<14x1x128xf32>
      %82 = arith.addf %73, %81 : vector<14x1x128xf32>
      %83 = vector.extract_strided_slice %77 {offsets = [1, 0, 0], sizes = [14, 1, 128], strides = [1, 1, 1]} : vector<16x1x128xf32> to vector<14x1x128xf32>
      %84 = vector.shape_cast %9 : vector<1x128xf32> to vector<1x1x128xf32>
      %85 = vector.broadcast %84 : vector<1x1x128xf32> to vector<14x1x128xf32>
      %86 = arith.mulf %85, %83 : vector<14x1x128xf32>
      %87 = arith.addf %82, %86 : vector<14x1x128xf32>
      %88 = vector.extract_strided_slice %77 {offsets = [2, 0, 0], sizes = [14, 1, 128], strides = [1, 1, 1]} : vector<16x1x128xf32> to vector<14x1x128xf32>
      %89 = vector.shape_cast %11 : vector<1x128xf32> to vector<1x1x128xf32>
      %90 = vector.broadcast %89 : vector<1x1x128xf32> to vector<14x1x128xf32>
      %91 = arith.mulf %90, %88 : vector<14x1x128xf32>
      %92 = arith.addf %87, %91 : vector<14x1x128xf32>
      %c2_i32 = arith.constant 2 : i32
      %93 = arith.addi %arg11, %c2_i32 : i32
      %94 = arith.index_cast %93 : i32 to index
      %c0_31 = arith.constant 0 : index
      %c0_32 = arith.constant 0 : index
      %c0_33 = arith.constant 0 : index
      %95 = vector.load %arg1[%94, %c0_31, %c0_32, %c0_33] : memref<16x16x1x128xf32, #tpu.memory_space<vmem>>, vector<1x16x1x128xf32>
      %96 = vector.shape_cast %95 : vector<1x16x1x128xf32> to vector<16x1x128xf32>
      %97 = vector.extract_strided_slice %96 {offsets = [0, 0, 0], sizes = [14, 1, 128], strides = [1, 1, 1]} : vector<16x1x128xf32> to vector<14x1x128xf32>
      %98 = vector.shape_cast %13 : vector<1x128xf32> to vector<1x1x128xf32>
      %99 = vector.broadcast %98 : vector<1x1x128xf32> to vector<14x1x128xf32>
      %100 = arith.mulf %99, %97 : vector<14x1x128xf32>
      %101 = arith.addf %92, %100 : vector<14x1x128xf32>
      %102 = vector.extract_strided_slice %96 {offsets = [1, 0, 0], sizes = [14, 1, 128], strides = [1, 1, 1]} : vector<16x1x128xf32> to vector<14x1x128xf32>
      %103 = vector.shape_cast %15 : vector<1x128xf32> to vector<1x1x128xf32>
      %104 = vector.broadcast %103 : vector<1x1x128xf32> to vector<14x1x128xf32>
      %105 = arith.mulf %104, %102 : vector<14x1x128xf32>
      %106 = arith.addf %101, %105 : vector<14x1x128xf32>
      %107 = vector.extract_strided_slice %96 {offsets = [2, 0, 0], sizes = [14, 1, 128], strides = [1, 1, 1]} : vector<16x1x128xf32> to vector<14x1x128xf32>
      %108 = vector.shape_cast %17 : vector<1x128xf32> to vector<1x1x128xf32>
      %109 = vector.broadcast %108 : vector<1x1x128xf32> to vector<14x1x128xf32>
      %110 = arith.mulf %109, %107 : vector<14x1x128xf32>
      %111 = arith.addf %106, %110 : vector<14x1x128xf32>
      %112 = arith.index_cast %arg11 : i32 to index
      %c0_34 = arith.constant 0 : index
      %c0_35 = arith.constant 0 : index
      %c0_36 = arith.constant 0 : index
      %113 = vector.load %arg9[%112, %c0_34, %c0_35, %c0_36] : memref<14x14x1x128xf32, #tpu.memory_space<vmem>>, vector<1x14x1x128xf32>
      %114 = vector.shape_cast %113 : vector<1x14x1x128xf32> to vector<14x1x128xf32>
      %115 = vector.shape_cast %111 : vector<14x1x128xf32> to vector<1x14x1x128xf32>
      tpu.vector_store %arg9[%112, %c0_34, %c0_35, %c0_36], %115 {strides = array<i32>} : memref<14x14x1x128xf32, #tpu.memory_space<vmem>>, vector<1x14x1x128xf32>,
    }
    %c14_i32_1 = arith.constant 14 : i32
    %c0_2 = arith.constant 0 : index
    %21 = memref.load %arg4[%c0_2] : memref<9xf32, #tpu.memory_space<smem>>
    %22 = vector.broadcast %21 : f32 to vector<1x128xf32>
    %c1_3 = arith.constant 1 : index
    %23 = memref.load %arg4[%c1_3] : memref<9xf32, #tpu.memory_space<smem>>
    %24 = vector.broadcast %23 : f32 to vector<1x128xf32>
    %c2_4 = arith.constant 2 : index
    %25 = memref.load %arg4[%c2_4] : memref<9xf32, #tpu.memory_space<smem>>
    %26 = vector.broadcast %25 : f32 to vector<1x128xf32>
    %c3_5 = arith.constant 3 : index
    %27 = memref.load %arg4[%c3_5] : memref<9xf32, #tpu.memory_space<smem>>
    %28 = vector.broadcast %27 : f32 to vector<1x128xf32>
    %c4_6 = arith.constant 4 : index
    %29 = memref.load %arg4[%c4_6] : memref<9xf32, #tpu.memory_space<smem>>
    %30 = vector.broadcast %29 : f32 to vector<1x128xf32>
    %c5_7 = arith.constant 5 : index
    %31 = memref.load %arg4[%c5_7] : memref<9xf32, #tpu.memory_space<smem>>
    %32 = vector.broadcast %31 : f32 to vector<1x128xf32>
    %c6_8 = arith.constant 6 : index
    %33 = memref.load %arg4[%c6_8] : memref<9xf32, #tpu.memory_space<smem>>
    %34 = vector.broadcast %33 : f32 to vector<1x128xf32>
    %c7_9 = arith.constant 7 : index
    %35 = memref.load %arg4[%c7_9] : memref<9xf32, #tpu.memory_space<smem>>
    %36 = vector.broadcast %35 : f32 to vector<1x128xf32>
    %c8_10 = arith.constant 8 : index
    %37 = memref.load %arg4[%c8_10] : memref<9xf32, #tpu.memory_space<smem>>
    %38 = vector.broadcast %37 : f32 to vector<1x128xf32>
    %c0_11 = arith.constant 0 : index
    %39 = memref.load %arg5[%c0_11] : memref<1xf32, #tpu.memory_space<smem>>
    %40 = vector.broadcast %39 : f32 to vector<1x128xf32>
    %c0_i32_12 = arith.constant 0 : i32
    %c12_i32 = arith.constant 12 : i32
    %41 = arith.addi %c0_i32_12, %c12_i32 : i32
    %c1_i32_13 = arith.constant 1 : i32
    scf.for %arg11 = %c0_i32_12 to %41 step %c1_i32_13  : i32 {
      %c0_i32_23 = arith.constant 0 : i32
      %53 = arith.addi %arg11, %c0_i32_23 : i32
      %54 = arith.index_cast %53 : i32 to index
      %c0_24 = arith.constant 0 : index
      %c0_25 = arith.constant 0 : index
      %c0_26 = arith.constant 0 : index
      %55 = vector.load %arg9[%54, %c0_24, %c0_25, %c0_26] : memref<14x14x1x128xf32, #tpu.memory_space<vmem>>, vector<1x14x1x128xf32>
      %56 = vector.shape_cast %55 : vector<1x14x1x128xf32> to vector<14x1x128xf32>
      %57 = vector.extract_strided_slice %56 {offsets = [0, 0, 0], sizes = [12, 1, 128], strides = [1, 1, 1]} : vector<14x1x128xf32> to vector<12x1x128xf32>
      %58 = vector.shape_cast %22 : vector<1x128xf32> to vector<1x1x128xf32>
      %59 = vector.broadcast %58 : vector<1x1x128xf32> to vector<12x1x128xf32>
      %60 = arith.mulf %59, %57 : vector<12x1x128xf32>
      %61 = vector.shape_cast %40 : vector<1x128xf32> to vector<1x1x128xf32>
      %62 = vector.broadcast %61 : vector<1x1x128xf32> to vector<12x1x128xf32>
      %63 = arith.addf %62, %60 : vector<12x1x128xf32>
      %64 = vector.extract_strided_slice %56 {offsets = [1, 0, 0], sizes = [12, 1, 128], strides = [1, 1, 1]} : vector<14x1x128xf32> to vector<12x1x128xf32>
      %65 = vector.shape_cast %24 : vector<1x128xf32> to vector<1x1x128xf32>
      %66 = vector.broadcast %65 : vector<1x1x128xf32> to vector<12x1x128xf32>
      %67 = arith.mulf %66, %64 : vector<12x1x128xf32>
      %68 = arith.addf %63, %67 : vector<12x1x128xf32>
      %69 = vector.extract_strided_slice %56 {offsets = [2, 0, 0], sizes = [12, 1, 128], strides = [1, 1, 1]} : vector<14x1x128xf32> to vector<12x1x128xf32>
      %70 = vector.shape_cast %26 : vector<1x128xf32> to vector<1x1x128xf32>
      %71 = vector.broadcast %70 : vector<1x1x128xf32> to vector<12x1x128xf32>
      %72 = arith.mulf %71, %69 : vector<12x1x128xf32>
      %73 = arith.addf %68, %72 : vector<12x1x128xf32>
      %c1_i32_27 = arith.constant 1 : i32
      %74 = arith.addi %arg11, %c1_i32_27 : i32
      %75 = arith.index_cast %74 : i32 to index
      %c0_28 = arith.constant 0 : index
      %c0_29 = arith.constant 0 : index
      %c0_30 = arith.constant 0 : index
      %76 = vector.load %arg9[%75, %c0_28, %c0_29, %c0_30] : memref<14x14x1x128xf32, #tpu.memory_space<vmem>>, vector<1x14x1x128xf32>
      %77 = vector.shape_cast %76 : vector<1x14x1x128xf32> to vector<14x1x128xf32>
      %78 = vector.extract_strided_slice %77 {offsets = [0, 0, 0], sizes = [12, 1, 128], strides = [1, 1, 1]} : vector<14x1x128xf32> to vector<12x1x128xf32>
      %79 = vector.shape_cast %28 : vector<1x128xf32> to vector<1x1x128xf32>
      %80 = vector.broadcast %79 : vector<1x1x128xf32> to vector<12x1x128xf32>
      %81 = arith.mulf %80, %78 : vector<12x1x128xf32>
      %82 = arith.addf %73, %81 : vector<12x1x128xf32>
      %83 = vector.extract_strided_slice %77 {offsets = [1, 0, 0], sizes = [12, 1, 128], strides = [1, 1, 1]} : vector<14x1x128xf32> to vector<12x1x128xf32>
      %84 = vector.shape_cast %30 : vector<1x128xf32> to vector<1x1x128xf32>
      %85 = vector.broadcast %84 : vector<1x1x128xf32> to vector<12x1x128xf32>
      %86 = arith.mulf %85, %83 : vector<12x1x128xf32>
      %87 = arith.addf %82, %86 : vector<12x1x128xf32>
      %88 = vector.extract_strided_slice %77 {offsets = [2, 0, 0], sizes = [12, 1, 128], strides = [1, 1, 1]} : vector<14x1x128xf32> to vector<12x1x128xf32>
      %89 = vector.shape_cast %32 : vector<1x128xf32> to vector<1x1x128xf32>
      %90 = vector.broadcast %89 : vector<1x1x128xf32> to vector<12x1x128xf32>
      %91 = arith.mulf %90, %88 : vector<12x1x128xf32>
      %92 = arith.addf %87, %91 : vector<12x1x128xf32>
      %c2_i32 = arith.constant 2 : i32
      %93 = arith.addi %arg11, %c2_i32 : i32
      %94 = arith.index_cast %93 : i32 to index
      %c0_31 = arith.constant 0 : index
      %c0_32 = arith.constant 0 : index
      %c0_33 = arith.constant 0 : index
      %95 = vector.load %arg9[%94, %c0_31, %c0_32, %c0_33] : memref<14x14x1x128xf32, #tpu.memory_space<vmem>>, vector<1x14x1x128xf32>
      %96 = vector.shape_cast %95 : vector<1x14x1x128xf32> to vector<14x1x128xf32>
      %97 = vector.extract_strided_slice %96 {offsets = [0, 0, 0], sizes = [12, 1, 128], strides = [1, 1, 1]} : vector<14x1x128xf32> to vector<12x1x128xf32>
      %98 = vector.shape_cast %34 : vector<1x128xf32> to vector<1x1x128xf32>
      %99 = vector.broadcast %98 : vector<1x1x128xf32> to vector<12x1x128xf32>
      %100 = arith.mulf %99, %97 : vector<12x1x128xf32>
      %101 = arith.addf %92, %100 : vector<12x1x128xf32>
      %102 = vector.extract_strided_slice %96 {offsets = [1, 0, 0], sizes = [12, 1, 128], strides = [1, 1, 1]} : vector<14x1x128xf32> to vector<12x1x128xf32>
      %103 = vector.shape_cast %36 : vector<1x128xf32> to vector<1x1x128xf32>
      %104 = vector.broadcast %103 : vector<1x1x128xf32> to vector<12x1x128xf32>
      %105 = arith.mulf %104, %102 : vector<12x1x128xf32>
      %106 = arith.addf %101, %105 : vector<12x1x128xf32>
      %107 = vector.extract_strided_slice %96 {offsets = [2, 0, 0], sizes = [12, 1, 128], strides = [1, 1, 1]} : vector<14x1x128xf32> to vector<12x1x128xf32>
      %108 = vector.shape_cast %38 : vector<1x128xf32> to vector<1x1x128xf32>
      %109 = vector.broadcast %108 : vector<1x1x128xf32> to vector<12x1x128xf32>
      %110 = arith.mulf %109, %107 : vector<12x1x128xf32>
      %111 = arith.addf %106, %110 : vector<12x1x128xf32>
      %112 = arith.index_cast %arg11 : i32 to index
      %c0_34 = arith.constant 0 : index
      %c0_35 = arith.constant 0 : index
      %c0_36 = arith.constant 0 : index
      %113 = vector.load %arg10[%112, %c0_34, %c0_35, %c0_36] : memref<12x12x1x128xf32, #tpu.memory_space<vmem>>, vector<1x12x1x128xf32>
      %114 = vector.shape_cast %113 : vector<1x12x1x128xf32> to vector<12x1x128xf32>
      %115 = vector.shape_cast %111 : vector<12x1x128xf32> to vector<1x12x1x128xf32>
      tpu.vector_store %arg10[%112, %c0_34, %c0_35, %c0_36], %115 {strides = array<i32>} : memref<12x12x1x128xf32, #tpu.memory_space<vmem>>, vector<1x12x1x128xf32>,
    }
    %c12_i32_14 = arith.constant 12 : i32
    %c0_15 = arith.constant 0 : index
    %42 = memref.load %arg6[%c0_15] : memref<4xf32, #tpu.memory_space<smem>>
    %43 = vector.broadcast %42 : f32 to vector<1x128xf32>
    %c1_16 = arith.constant 1 : index
    %44 = memref.load %arg6[%c1_16] : memref<4xf32, #tpu.memory_space<smem>>
    %45 = vector.broadcast %44 : f32 to vector<1x128xf32>
    %c2_17 = arith.constant 2 : index
    %46 = memref.load %arg6[%c2_17] : memref<4xf32, #tpu.memory_space<smem>>
    %47 = vector.broadcast %46 : f32 to vector<1x128xf32>
    %c3_18 = arith.constant 3 : index
    %48 = memref.load %arg6[%c3_18] : memref<4xf32, #tpu.memory_space<smem>>
    %49 = vector.broadcast %48 : f32 to vector<1x128xf32>
    %c0_19 = arith.constant 0 : index
    %50 = memref.load %arg7[%c0_19] : memref<1xf32, #tpu.memory_space<smem>>
    %51 = vector.broadcast %50 : f32 to vector<1x128xf32>
    %c0_i32_20 = arith.constant 0 : i32
    %c11_i32 = arith.constant 11 : i32
    %52 = arith.addi %c0_i32_20, %c11_i32 : i32
    %c1_i32_21 = arith.constant 1 : i32
    scf.for %arg11 = %c0_i32_20 to %52 step %c1_i32_21  : i32 {
      %c0_i32_23 = arith.constant 0 : i32
      %53 = arith.addi %arg11, %c0_i32_23 : i32
      %54 = arith.index_cast %53 : i32 to index
      %c0_24 = arith.constant 0 : index
      %c0_25 = arith.constant 0 : index
      %c0_26 = arith.constant 0 : index
      %55 = vector.load %arg10[%54, %c0_24, %c0_25, %c0_26] : memref<12x12x1x128xf32, #tpu.memory_space<vmem>>, vector<1x12x1x128xf32>
      %56 = vector.shape_cast %55 : vector<1x12x1x128xf32> to vector<12x1x128xf32>
      %57 = vector.extract_strided_slice %56 {offsets = [0, 0, 0], sizes = [11, 1, 128], strides = [1, 1, 1]} : vector<12x1x128xf32> to vector<11x1x128xf32>
      %58 = vector.shape_cast %43 : vector<1x128xf32> to vector<1x1x128xf32>
      %59 = vector.broadcast %58 : vector<1x1x128xf32> to vector<11x1x128xf32>
      %60 = arith.mulf %59, %57 : vector<11x1x128xf32>
      %61 = vector.shape_cast %51 : vector<1x128xf32> to vector<1x1x128xf32>
      %62 = vector.broadcast %61 : vector<1x1x128xf32> to vector<11x1x128xf32>
      %63 = arith.addf %62, %60 : vector<11x1x128xf32>
      %64 = vector.extract_strided_slice %56 {offsets = [1, 0, 0], sizes = [11, 1, 128], strides = [1, 1, 1]} : vector<12x1x128xf32> to vector<11x1x128xf32>
      %65 = vector.shape_cast %45 : vector<1x128xf32> to vector<1x1x128xf32>
      %66 = vector.broadcast %65 : vector<1x1x128xf32> to vector<11x1x128xf32>
      %67 = arith.mulf %66, %64 : vector<11x1x128xf32>
      %68 = arith.addf %63, %67 : vector<11x1x128xf32>
      %c1_i32_27 = arith.constant 1 : i32
      %69 = arith.addi %arg11, %c1_i32_27 : i32
      %70 = arith.index_cast %69 : i32 to index
      %c0_28 = arith.constant 0 : index
      %c0_29 = arith.constant 0 : index
      %c0_30 = arith.constant 0 : index
      %71 = vector.load %arg10[%70, %c0_28, %c0_29, %c0_30] : memref<12x12x1x128xf32, #tpu.memory_space<vmem>>, vector<1x12x1x128xf32>
      %72 = vector.shape_cast %71 : vector<1x12x1x128xf32> to vector<12x1x128xf32>
      %73 = vector.extract_strided_slice %72 {offsets = [0, 0, 0], sizes = [11, 1, 128], strides = [1, 1, 1]} : vector<12x1x128xf32> to vector<11x1x128xf32>
      %74 = vector.shape_cast %47 : vector<1x128xf32> to vector<1x1x128xf32>
      %75 = vector.broadcast %74 : vector<1x1x128xf32> to vector<11x1x128xf32>
      %76 = arith.mulf %75, %73 : vector<11x1x128xf32>
      %77 = arith.addf %68, %76 : vector<11x1x128xf32>
      %78 = vector.extract_strided_slice %72 {offsets = [1, 0, 0], sizes = [11, 1, 128], strides = [1, 1, 1]} : vector<12x1x128xf32> to vector<11x1x128xf32>
      %79 = vector.shape_cast %49 : vector<1x128xf32> to vector<1x1x128xf32>
      %80 = vector.broadcast %79 : vector<1x1x128xf32> to vector<11x1x128xf32>
      %81 = arith.mulf %80, %78 : vector<11x1x128xf32>
      %82 = arith.addf %77, %81 : vector<11x1x128xf32>
      %83 = arith.index_cast %arg11 : i32 to index
      %c0_31 = arith.constant 0 : index
      %c0_32 = arith.constant 0 : index
      %c0_33 = arith.constant 0 : index
      %84 = vector.load %arg8[%83, %c0_31, %c0_32, %c0_33] : memref<11x11x1x128xf32, #tpu.memory_space<vmem>>, vector<1x11x1x128xf32>
      %85 = vector.shape_cast %84 : vector<1x11x1x128xf32> to vector<11x1x128xf32>
      %86 = vector.shape_cast %82 : vector<11x1x128xf32> to vector<1x11x1x128xf32>
      tpu.vector_store %arg8[%83, %c0_31, %c0_32, %c0_33], %86 {strides = array<i32>} : memref<11x11x1x128xf32, #tpu.memory_space<vmem>>, vector<1x11x1x128xf32>,
    }
    %c11_i32_22 = arith.constant 11 : i32
    return
  }
  func.func @transform_0(%arg0: i32) -> (i32, i32, i32, i32) {
    %c0_i32 = arith.constant 0 : i32
    %c0_i32_0 = arith.constant 0 : i32
    %c0_i32_1 = arith.constant 0 : i32
    %c0_i32_2 = arith.constant 0 : i32
    return %c0_i32, %c0_i32_0, %arg0, %c0_i32_1 : i32, i32, i32, i32
  }
  func.func @transform_1(%arg0: i32) -> i32 {
    %c0_i32 = arith.constant 0 : i32
    %c0_i32_0 = arith.constant 0 : i32
    return %c0_i32 : i32
  }
  func.func @transform_2(%arg0: i32) -> i32 {
    %c0_i32 = arith.constant 0 : i32
    %c0_i32_0 = arith.constant 0 : i32
    return %c0_i32 : i32
  }
  func.func @transform_3(%arg0: i32) -> i32 {
    %c0_i32 = arith.constant 0 : i32
    %c0_i32_0 = arith.constant 0 : i32
    return %c0_i32 : i32
  }
  func.func @transform_4(%arg0: i32) -> i32 {
    %c0_i32 = arith.constant 0 : i32
    %c0_i32_0 = arith.constant 0 : i32
    return %c0_i32 : i32
  }
  func.func @transform_5(%arg0: i32) -> i32 {
    %c0_i32 = arith.constant 0 : i32
    %c0_i32_0 = arith.constant 0 : i32
    return %c0_i32 : i32
  }
  func.func @transform_6(%arg0: i32) -> i32 {
    %c0_i32 = arith.constant 0 : i32
    %c0_i32_0 = arith.constant 0 : i32
    return %c0_i32 : i32
  }
  func.func @transform_7(%arg0: i32) -> (i32, i32, i32, i32) {
    %c0_i32 = arith.constant 0 : i32
    %c0_i32_0 = arith.constant 0 : i32
    %c0_i32_1 = arith.constant 0 : i32
    %c0_i32_2 = arith.constant 0 : i32
    return %c0_i32, %c0_i32_0, %arg0, %c0_i32_1 : i32, i32, i32, i32
  }
}

</mosaic_0001>

<bundles_post_ra>
// kernel: tpu_custom_call.1
= control target key start
LH: loop header
LB: loop body
LE: loop exit
PB: predicated region body
PF: predicated region fallthrough
CT: control target
= control target key end

     0   :  { %s1889_s0 = inlined_call_operand.hbm [shape: f32[16,16,1,128], index: 0, kind: input, shape index: {}]   ;;  %s1890_s1 = inlined_call_operand.vmem [shape: f32[9], index: 1, kind: input, shape index: {}]   ;;  %s1891_s2 = inlined_call_operand.<no memory space> [shape: f32[1], index: 2, kind: input, shape index: {}]   ;;  %s1892_s3 = inlined_call_operand.vmem [shape: f32[9], index: 3, kind: input, shape index: {}]   ;;  %s1893_s4 = inlined_call_operand.<no memory space> [shape: f32[1], index: 4, kind: input, shape index: {}]   ;;  %s1894_s5 = inlined_call_operand.vmem [shape: f32[4], index: 5, kind: input, shape index: {}]   ;;  %s1895_s6 = inlined_call_operand.<no memory space> [shape: f32[1], index: 6, kind: input, shape index: {}]   ;;  %s1896_s7 = inlined_call_operand.hbm [shape: f32[11,11,1,128], index: 7, kind: output, shape index: {}]  }
   0x1   :  { %13 = sst [smem:[#allocation5]] %s1893_s4 }
   0x2   :  { %14 = sst [smem:[#allocation6]] %s1895_s6 }
   0x3   :  { %15 = vsyncpa [#allocation8], 0 }
   0x4   :  { %16 = vsyncpa [#allocation10], 0 }
   0x5   :  { %17 = vsyncpa [#allocation13], 0  ;;  %s49_s30 = sshll.u32 %s1892_s3, 4  ;;  %s50_s30 = int_to_ptr.vmem [resolvable:$true] %s49_s30 }
   0x6   :  { %18 = vsyncpa [#allocation9], 0  ;;  %s1068_s8 = scalar_lea.vmem %s50_s30, 16  ;;  %p1073_p1 = scmp.lt.s32.totalorder %s50_s30, %s50_s30 }
   0x7   :  { %p1069_p0 = scmp.ne.s32.totalorder %s50_s30, %s1068_s8  ;;  %p1074_p2 = scmp.lt.s32.totalorder %s1068_s8, %s1068_s8 }
   0x9   :  { %p1075_p3 = por %p1074_p2, %p1073_p1 }
   0xb   :  { %p1076_p4 = pnand %p1075_p3, %p1069_p0 }
   0xd   :  { %1079 = shalt.err (!%p1076_p4)
}
   0xe   :  { %s1176_s4 = smov [#allocation12]   ;;  %s1177_s9 = smov [#allocation7]  }
   0xf   :  { %52 = dma.vmem_to_smem %s50_s30, 16, %s1176_s4, [#allocation13]  }
  0x10   :  { %s24_s6 = sshll.u32 %s1177_s9, 4  ;;  %s25_s6 = int_to_ptr.vmem [resolvable:$true] %s24_s6 }
  0x11   :  { %s1088_s10 = scalar_lea.vmem %s25_s6, 4096  ;;  %p1093_p6 = scmp.lt.s32.totalorder %s25_s6, %s25_s6 }
  0x12   :  { %p1089_p5 = scmp.ne.s32.totalorder %s25_s6, %s1088_s10  ;;  %p1094_p7 = scmp.lt.s32.totalorder %s1088_s10, %s1088_s10 }
  0x14   :  { %p1095_p8 = por %p1094_p7, %p1093_p6 }
  0x16   :  { %p1096_p9 = pnand %p1095_p8, %p1089_p5 }
  0x18   :  { %1099 = shalt.err (!%p1096_p9)
}
  0x19   :  { %s1178_s3 = smov 16   ;;  %s1179_s11 = smov 1  }
  0x1a   :  { %30 = dma.hbm_to_vmem [thread:$0]  %s1889_s0, 4096, %s25_s6, [#allocation8], %s1178_s3, %s1178_s3, %s1179_s11  }
  0x1b   :  { %s37_s16 = sshll.u32 %s1890_s1, 4  ;;  %s61_s19 = sshll.u32 %s1894_s5, 4  ;;  %s38_s16 = int_to_ptr.vmem [resolvable:$true] %s37_s16  ;;  %s62_s19 = int_to_ptr.vmem [resolvable:$true] %s61_s19 }
  0x1c   :  { %s1100_s20 = scalar_lea.vmem %s38_s16, 16  ;;  %p1105_p11 = scmp.lt.s32.totalorder %s38_s16, %s38_s16 }
  0x1d   :  { %p1101_p10 = scmp.ne.s32.totalorder %s38_s16, %s1100_s20  ;;  %p1106_p12 = scmp.lt.s32.totalorder %s1100_s20, %s1100_s20 }
  0x1f   :  { %p1107_p13 = por %p1106_p12, %p1105_p11 }
  0x21   :  { %p1108_p0 = pnand %p1107_p13, %p1101_p10 }
  0x23   :  { %1111 = shalt.err (!%p1108_p0)
}
  0x24   :  { %s1180_s21 = smov [#allocation11]   ;;  %s1112_s0 = scalar_lea.vmem %s62_s19, 16 }
  0x25   :  { %40 = dma.vmem_to_smem %s38_s16, 16, %s1180_s21, [#allocation10]  }
  0x26   :  { %p1113_p1 = scmp.ne.s32.totalorder %s62_s19, %s1112_s0  ;;  %p1117_p2 = scmp.lt.s32.totalorder %s62_s19, %s62_s19 }
  0x27   :  { %p1118_p3 = scmp.lt.s32.totalorder %s1112_s0, %s1112_s0 }
  0x29   :  { %p1119_p4 = por %p1118_p3, %p1117_p2 }
  0x2b   :  { %p1120_p5 = pnand %p1119_p4, %p1113_p1 }
  0x2d   :  { %1123 = shalt.err (!%p1120_p5)
}
  0x2e   :  { %s1181_s1 = smov [#allocation14]  }
  0x2f   :  { %64 = dma.vmem_to_smem %s62_s19, 16, %s1181_s1, [#allocation13]  }
  0x30   :  { %1156 = dma.done.wait [#allocation8], 4096  }
  0x31   :  { %1157 = vsyncadd [#allocation8], 4294963200 }
  0x32   :  { %1158 = dma.done.wait [#allocation10], 16  }
  0x33   :  { %1159 = vsyncadd [#allocation10], 4294967280 }
  0x34   :  { %1160 = dma.done.wait [#allocation13], 32  }
  0x35   :  { %1161 = vsyncadd [#allocation13], 4294967264 }
  0x36   :  { %79 = sfence }
  0x37   :  { %s1244_s5 = sld [smem:[#allocation11]]  ;;  %s1262_s30 = smov 0  }
  0x38   :  { %s1246_s22 = sld [smem:[#allocation11 + $0x1]] }
  0x39   :  { %s1248_s23 = sld [smem:[#allocation11 + $0x2]] }
  0x3a   :  { %s1250_s24 = sld [smem:[#allocation11 + $0x3]] }
  0x3b   :  { %s1252_s25 = sld [smem:[#allocation11 + $0x4]] }
  0x3c   :  { %s1254_s26 = sld [smem:[#allocation11 + $0x5]] }
  0x3d   :  { %s1256_s27 = sld [smem:[#allocation11 + $0x6]] }
  0x3e   :  { %s1258_s28 = sld [smem:[#allocation11 + $0x7]] }
  0x3f   :  { %s1260_s29 = sld [smem:[#allocation11 + $0x8]] }
  0x40 LB: > { %s951_s8 = sshll.u32 %s1166_s30, 4  ;;  %v1269_v0 = vstv %s1244_s5  ;;  %v1272_v1 = vstv %s1246_s22  ;;  %v1277_v2 = vstv %s1891_s2  ;;  %v1284_v5 = vstv %s1248_s23  ;;  %s414_s10 = smul.u32 14, %s1166_s30  ;;  %s1166_s30 = sphi %s1262_s30, %s95_s30  }
  0x41   : > { %s1279_s6 = scalar_lea.vmem [#allocation7], %s951_s8  ;;  %v1287_v6 = vstv %s1250_s24  ;;  %v1294_v11 = vstv %s1252_s25  ;;  %s95_s30 = sadd.s32 1, %s1166_s30  }
  0x42   : > { %v98_v3 = vld [vmem:[%s1279_s6] sm:$0x1]  ;;  %v99_v4 = vld [vmem:[%s1279_s6 + $0x1] sm:$0x1]  ;;  %v100_v7 = vld [vmem:[%s1279_s6 + $0x2] sm:$0x1]  ;;  %v1298_v13 = vstv %s1254_s26 }
  0x43   : > { %v115_v8 = vmul.f32 %v1269_v0, %v98_v3  ;;  %v145_v9 = vmul.f32 %v1272_v1, %v99_v4  ;;  %v953_v10 = vld [vmem:[%s1279_s6 + $0x10] sm:$0x1]  ;;  %v116_v12 = vmul.f32 %v1269_v0, %v99_v4  ;;  %v970_v14 = vld [vmem:[%s1279_s6 + $0x20] sm:$0x1]  ;;  %v1302_v15 = vstv %s1256_s27  ;;  %v954_v20 = vld [vmem:[%s1279_s6 + $0x11] sm:$0x1] }
  0x44   : > { %v1305_v16 = vstv %s1258_s28  ;;  %v146_v17 = vmul.f32 %v1272_v1, %v100_v7  ;;  %v174_v19 = vmul.f32 %v1284_v5, %v100_v7  ;;  %v101_v22 = vld [vmem:[%s1279_s6 + $0x3] sm:$0x1]  ;;  %v955_v23 = vld [vmem:[%s1279_s6 + $0x12] sm:$0x1]  ;;  %v222_v24 = vmul.f32 %v953_v10, %v1287_v6  ;;  %v971_v26 = vld [vmem:[%s1279_s6 + $0x21] sm:$0x1] }
  0x45   : > { %v130_v18 = vadd.f32 %v1277_v2, %v115_v8  ;;  %v1312_v21 = vstv %s1260_s29  ;;  %v251_v25 = vmul.f32 %v954_v20, %v1294_v11  ;;  %v131_v27 = vadd.f32 %v1277_v2, %v116_v12  ;;  %v972_v33 = vld [vmem:[%s1279_s6 + $0x22] sm:$0x1]  ;;  %v956_v35 = vld [vmem:[%s1279_s6 + $0x13] sm:$0x1]  ;;  %v102_v43 = vld [vmem:[%s1279_s6 + $0x4] sm:$0x1] }
  0x46   : > { %v175_v28 = vmul.f32 %v1284_v5, %v101_v22  ;;  %v280_v30 = vmul.f32 %v955_v23, %v1298_v13  ;;  %v328_v31 = vmul.f32 %v970_v14, %v1302_v15  ;;  %v357_v32 = vmul.f32 %v971_v26, %v1305_v16  ;;  %v973_v45 = vld [vmem:[%s1279_s6 + $0x23] sm:$0x1]  ;;  %v103_v56 = vld [vmem:[%s1279_s6 + $0x5] sm:$0x1]  ;;  %v957_v59 = vld [vmem:[%s1279_s6 + $0x14] sm:$0x1] }
  0x47   : > { %v159_v29 = vadd.f32 %v145_v9, %v130_v18  ;;  %v160_v34 = vadd.f32 %v146_v17, %v131_v27  ;;  %v223_v36 = vmul.f32 %v954_v20, %v1287_v6  ;;  %v117_v37 = vmul.f32 %v1269_v0, %v100_v7  ;;  %v974_v18 = vld [vmem:[%s1279_s6 + $0x24] sm:$0x1]  ;;  %s1370_s12 = scalar_lea.vmem [#allocation2], %s414_s10  ;;  %p92_p6 = scmp.ge.s32.totalorder %s95_s30, 14  }
  0x48   : > { %v147_v38 = vmul.f32 %v1272_v1, %v101_v22  ;;  %v386_v40 = vmul.f32 %v972_v33, %v1312_v21  ;;  %v252_v41 = vmul.f32 %v955_v23, %v1294_v11  ;;  %v281_v42 = vmul.f32 %v956_v35, %v1298_v13  ;;  %s1512_s13 = sld [smem:[#allocation12]] (%p92_p6)  ;;  %s1532_s2 = smov (%p92_p6), 0  }
  0x49   : > { %v188_v39 = vadd.f32 %v174_v19, %v159_v29  ;;  %v189_v44 = vadd.f32 %v175_v28, %v160_v34  ;;  %v329_v46 = vmul.f32 %v971_v26, %v1302_v15  ;;  %v132_v47 = vadd.f32 %v1277_v2, %v117_v37  ;;  %v104_v26 = vld [vmem:[%s1279_s6 + $0x6] sm:$0x1]  ;;  %v958_v29 = vld [vmem:[%s1279_s6 + $0x15] sm:$0x1]  ;;  %s1514_s14 = sld [smem:[#allocation12 + $0x1]] (%p92_p6) }
  0x4a   : > { %v176_v48 = vmul.f32 %v1284_v5, %v102_v43  ;;  %v358_v50 = vmul.f32 %v972_v33, %v1305_v16  ;;  %v387_v51 = vmul.f32 %v973_v45, %v1312_v21  ;;  %v118_v52 = vmul.f32 %v1269_v0, %v101_v22  ;;  %s1516_s15 = sld [smem:[#allocation12 + $0x2]] (%p92_p6) }
  0x4b   : > { %v236_v49 = vadd.f32 %v222_v24, %v188_v39  ;;  %v237_v53 = vadd.f32 %v223_v36, %v189_v44  ;;  %v161_v54 = vadd.f32 %v147_v38, %v132_v47  ;;  %v224_v55 = vmul.f32 %v955_v23, %v1287_v6  ;;  %s1518_s16 = sld [smem:[#allocation12 + $0x3]] (%p92_p6) }
  0x4c   : > { %v148_v57 = vmul.f32 %v1272_v1, %v102_v43  ;;  %v253_v60 = vmul.f32 %v956_v35, %v1294_v11  ;;  %v133_v61 = vadd.f32 %v1277_v2, %v118_v52  ;;  %v177_v62 = vmul.f32 %v1284_v5, %v103_v56  ;;  %s1520_s17 = sld [smem:[#allocation12 + $0x4]] (%p92_p6) }
  0x4d   : > { %v265_v58 = vadd.f32 %v251_v25, %v236_v49  ;;  %v266_v63 = vadd.f32 %v252_v41, %v237_v53  ;;  %v190_v3 = vadd.f32 %v176_v48, %v161_v54  ;;  %v282_v4 = vmul.f32 %v957_v59, %v1298_v13  ;;  %v105_v49 = vld [vmem:[%s1279_s6 + $0x7] sm:$0x1]  ;;  %s1522_s18 = sld [smem:[#allocation12 + $0x5]] (%p92_p6) }
  0x4e   : > { %v330_v7 = vmul.f32 %v972_v33, %v1302_v15  ;;  %v359_v9 = vmul.f32 %v973_v45, %v1305_v16  ;;  %v162_v10 = vadd.f32 %v148_v57, %v133_v61  ;;  %v225_v12 = vmul.f32 %v956_v35, %v1287_v6  ;;  %s1524_s19 = sld [smem:[#allocation12 + $0x6]] (%p92_p6) }
  0x4f   : > { %v294_v8 = vadd.f32 %v280_v30, %v265_v58  ;;  %v295_v14 = vadd.f32 %v281_v42, %v266_v63  ;;  %v238_v17 = vadd.f32 %v224_v55, %v190_v3  ;;  %v119_v19 = vmul.f32 %v1269_v0, %v102_v43  ;;  %v975_v55 = vld [vmem:[%s1279_s6 + $0x25] sm:$0x1]  ;;  %s1526_s20 = sld [smem:[#allocation12 + $0x7]] (%p92_p6) }
  0x50   : > { %v149_v20 = vmul.f32 %v1272_v1, %v103_v56  ;;  %v388_v23 = vmul.f32 %v974_v18, %v1312_v21  ;;  %v191_v24 = vadd.f32 %v177_v62, %v162_v10  ;;  %v254_v25 = vmul.f32 %v957_v59, %v1294_v11  ;;  %v106_v10 = vld [vmem:[%s1279_s6 + $0x8] sm:$0x1]  ;;  %s1528_s21 = sld [smem:[#allocation12 + $0x8]] (%p92_p6) }
  0x51   : > { %v342_v22 = vadd.f32 %v328_v31, %v294_v8  ;;  %v343_v27 = vadd.f32 %v329_v46, %v295_v14  ;;  %v267_v28 = vadd.f32 %v253_v60, %v238_v17  ;;  %v134_v30 = vadd.f32 %v1277_v2, %v119_v19  ;;  %v960_v19 = vld [vmem:[%s1279_s6 + $0x17] sm:$0x1]  ;;  %s1530_s0 = sld [smem:[#allocation5]] (%p92_p6) }
  0x52   : > { %v178_v33 = vmul.f32 %v1284_v5, %v104_v26  ;;  %v239_v35 = vadd.f32 %v225_v12, %v191_v24  ;;  %v283_v36 = vmul.f32 %v958_v29, %v1298_v13  ;;  %v331_v31 = vmul.f32 %v973_v45, %v1302_v15 }
  0x53   : > { %v371_v34 = vadd.f32 %v357_v32, %v342_v22  ;;  %v372_v37 = vadd.f32 %v358_v50, %v343_v27  ;;  %v296_v38 = vadd.f32 %v282_v4, %v267_v28  ;;  %v163_v39 = vadd.f32 %v149_v20, %v134_v30  ;;  %v959_v50 = vld [vmem:[%s1279_s6 + $0x16] sm:$0x1] }
  0x54   : > { %v226_v41 = vmul.f32 %v957_v59, %v1287_v6  ;;  %v268_v43 = vadd.f32 %v254_v25, %v239_v35  ;;  %v255_v44 = vmul.f32 %v958_v29, %v1294_v11  ;;  %v120_v46 = vmul.f32 %v1269_v0, %v103_v56 }
  0x55   : > { %v400_v42 = vadd.f32 %v386_v40, %v371_v34  ;;  %v401_v32 = vadd.f32 %v387_v51, %v372_v37  ;;  %v344_v47 = vadd.f32 %v330_v7, %v296_v38  ;;  %v192_v48 = vadd.f32 %v178_v33, %v163_v39 }
  0x56   : > { %v150_v52 = vmul.f32 %v1272_v1, %v104_v26  ;;  %v297_v45 = vadd.f32 %v283_v36, %v268_v43  ;;  %v360_v40 = vmul.f32 %v974_v18, %v1305_v16  ;;  %v135_v53 = vadd.f32 %v1277_v2, %v120_v46 }
  0x57   : > { %416 = vst [vmem:[%s1370_s12] sm:$0x1] %v400_v42  ;;  %v179_v54 = vmul.f32 %v1284_v5, %v105_v49  ;;  %417 = vst [vmem:[%s1370_s12 + $0x1] sm:$0x1] %v401_v32  ;;  %v373_v51 = vadd.f32 %v359_v9, %v344_v47  ;;  %v240_v56 = vadd.f32 %v226_v41, %v192_v48  ;;  %v107_v41 = vld [vmem:[%s1279_s6 + $0x9] sm:$0x1] }
  0x58   : > { %v284_v57 = vmul.f32 %v959_v50, %v1298_v13  ;;  %v345_v58 = vadd.f32 %v331_v31, %v297_v45  ;;  %v389_v59 = vmul.f32 %v975_v55, %v1312_v21  ;;  %v164_v60 = vadd.f32 %v150_v52, %v135_v53  ;;  %v977_v31 = vld [vmem:[%s1279_s6 + $0x27] sm:$0x1] }
  0x59   : > { %v227_v61 = vmul.f32 %v958_v29, %v1287_v6  ;;  %v402_v62 = vadd.f32 %v388_v23, %v373_v51  ;;  %v269_v63 = vadd.f32 %v255_v44, %v240_v56  ;;  %v332_v3 = vmul.f32 %v974_v18, %v1302_v15  ;;  %v976_v23 = vld [vmem:[%s1279_s6 + $0x26] sm:$0x1]  ;;  %v961_v44 = vld [vmem:[%s1279_s6 + $0x18] sm:$0x1] }
  0x5a   : > { %v121_v4 = vmul.f32 %v1269_v0, %v104_v26  ;;  %v374_v7 = vadd.f32 %v360_v40, %v345_v58  ;;  %v193_v8 = vadd.f32 %v179_v54, %v164_v60  ;;  %v256_v9 = vmul.f32 %v959_v50, %v1294_v11 }
  0x5b   : > { %v151_v12 = vmul.f32 %v1272_v1, %v105_v49  ;;  %418 = vst [vmem:[%s1370_s12 + $0x2] sm:$0x1] %v402_v62  ;;  %v298_v14 = vadd.f32 %v284_v57, %v269_v63  ;;  %v361_v17 = vmul.f32 %v975_v55, %v1305_v16  ;;  %v180_v18 = vmul.f32 %v1284_v5, %v106_v10  ;;  %v108_v57 = vld [vmem:[%s1279_s6 + $0xa] sm:$0x1] }
  0x5c   : > { %v136_v20 = vadd.f32 %v1277_v2, %v121_v4  ;;  %v403_v22 = vadd.f32 %v389_v59, %v374_v7  ;;  %v241_v24 = vadd.f32 %v227_v61, %v193_v8  ;;  %v285_v25 = vmul.f32 %v960_v19, %v1298_v13  ;;  %v978_v59 = vld [vmem:[%s1279_s6 + $0x28] sm:$0x1]  ;;  %v962_v61 = vld [vmem:[%s1279_s6 + $0x19] sm:$0x1] }
  0x5d   : > { %v346_v26 = vadd.f32 %v332_v3, %v298_v14  ;;  %v390_v27 = vmul.f32 %v976_v23, %v1312_v21  ;;  %v228_v29 = vmul.f32 %v959_v50, %v1287_v6  ;;  %v333_v33 = vmul.f32 %v975_v55, %v1302_v15 }
  0x5e   : > { %v165_v28 = vadd.f32 %v151_v12, %v136_v20  ;;  %419 = vst [vmem:[%s1370_s12 + $0x3] sm:$0x1] %v403_v22  ;;  %v270_v30 = vadd.f32 %v256_v9, %v241_v24  ;;  %v122_v34 = vmul.f32 %v1269_v0, %v105_v49  ;;  %v152_v35 = vmul.f32 %v1272_v1, %v106_v10  ;;  %v979_v24 = vld [vmem:[%s1279_s6 + $0x29] sm:$0x1] }
  0x5f   : > { %v375_v36 = vadd.f32 %v361_v17, %v346_v26  ;;  %v362_v37 = vmul.f32 %v976_v23, %v1305_v16  ;;  %v257_v39 = vmul.f32 %v960_v19, %v1294_v11  ;;  %v391_v43 = vmul.f32 %v977_v31, %v1312_v21  ;;  %v963_v26 = vld [vmem:[%s1279_s6 + $0x1a] sm:$0x1] }
  0x60   : > { %v194_v38 = vadd.f32 %v180_v18, %v165_v28  ;;  %v299_v42 = vadd.f32 %v285_v25, %v270_v30  ;;  %v137_v46 = vadd.f32 %v1277_v2, %v122_v34  ;;  %v181_v32 = vmul.f32 %v1284_v5, %v107_v41  ;;  %v109_v18 = vld [vmem:[%s1279_s6 + $0xb] sm:$0x1] }
  0x61   : > { %v404_v47 = vadd.f32 %v390_v27, %v375_v36  ;;  %v286_v49 = vmul.f32 %v961_v44, %v1298_v13  ;;  %v229_v52 = vmul.f32 %v960_v19, %v1287_v6  ;;  %v123_v50 = vmul.f32 %v1269_v0, %v106_v10 }
  0x62   : > { %v242_v48 = vadd.f32 %v228_v29, %v194_v38  ;;  %v347_v45 = vadd.f32 %v333_v33, %v299_v42  ;;  %v166_v40 = vadd.f32 %v152_v35, %v137_v46  ;;  %v153_v53 = vmul.f32 %v1272_v1, %v107_v41  ;;  %v980_v46 = vld [vmem:[%s1279_s6 + $0x2a] sm:$0x1] }
  0x63   : > { %420 = vst [vmem:[%s1370_s12 + $0x4] sm:$0x1] %v404_v47  ;;  %v334_v51 = vmul.f32 %v976_v23, %v1302_v15  ;;  %v363_v55 = vmul.f32 %v977_v31, %v1305_v16  ;;  %v258_v56 = vmul.f32 %v961_v44, %v1294_v11  ;;  %v138_v62 = vadd.f32 %v1277_v2, %v123_v50 }
  0x64   : > { %v271_v54 = vadd.f32 %v257_v39, %v242_v48  ;;  %v376_v58 = vadd.f32 %v362_v37, %v347_v45  ;;  %v195_v60 = vadd.f32 %v181_v32, %v166_v40  ;;  %v182_v63 = vmul.f32 %v1284_v5, %v108_v57  ;;  %v110_v48 = vld [vmem:[%s1279_s6 + $0xc] sm:$0x1]  ;;  %v964_v45 = vld [vmem:[%s1279_s6 + $0x1b] sm:$0x1] }
  0x65   : > { %v392_v4 = vmul.f32 %v978_v59, %v1312_v21  ;;  %v287_v7 = vmul.f32 %v962_v61, %v1298_v13  ;;  %v230_v8 = vmul.f32 %v961_v44, %v1287_v6  ;;  %v167_v12 = vadd.f32 %v153_v53, %v138_v62 }
  0x66   : > { %v300_v3 = vadd.f32 %v286_v49, %v271_v54  ;;  %v405_v9 = vadd.f32 %v391_v43, %v376_v58  ;;  %v243_v10 = vadd.f32 %v229_v52, %v195_v60  ;;  %v124_v14 = vmul.f32 %v1269_v0, %v107_v41 }
  0x67   : > { %v335_v19 = vmul.f32 %v977_v31, %v1302_v15  ;;  %v259_v20 = vmul.f32 %v962_v61, %v1294_v11  ;;  %v154_v22 = vmul.f32 %v1272_v1, %v108_v57  ;;  %v196_v25 = vadd.f32 %v182_v63, %v167_v12 }
  0x68   : > { %v348_v17 = vadd.f32 %v334_v51, %v300_v3  ;;  %421 = vst [vmem:[%s1370_s12 + $0x5] sm:$0x1] %v405_v9  ;;  %v272_v23 = vadd.f32 %v258_v56, %v243_v10  ;;  %v139_v27 = vadd.f32 %v1277_v2, %v124_v14  ;;  %v183_v28 = vmul.f32 %v1284_v5, %v109_v18  ;;  %v111_v3 = vld [vmem:[%s1279_s6 + $0xd] sm:$0x1] }
  0x69   : > { %v364_v30 = vmul.f32 %v978_v59, %v1305_v16  ;;  %v393_v33 = vmul.f32 %v979_v24, %v1312_v21  ;;  %v288_v34 = vmul.f32 %v963_v26, %v1298_v13  ;;  %v244_v36 = vadd.f32 %v230_v8, %v196_v25 }
  0x6a   : > { %v377_v29 = vadd.f32 %v363_v55, %v348_v17  ;;  %v301_v35 = vadd.f32 %v287_v7, %v272_v23  ;;  %v168_v31 = vadd.f32 %v154_v22, %v139_v27  ;;  %v231_v37 = vmul.f32 %v962_v61, %v1287_v6 }
  0x6b   : > { %v336_v39 = vmul.f32 %v978_v59, %v1302_v15  ;;  %v125_v41 = vmul.f32 %v1269_v0, %v108_v57  ;;  %v155_v42 = vmul.f32 %v1272_v1, %v109_v18  ;;  %v273_v44 = vadd.f32 %v259_v20, %v244_v36  ;;  %v965_v20 = vld [vmem:[%s1279_s6 + $0x1c] sm:$0x1] }
  0x6c   : > { %v406_v38 = vadd.f32 %v392_v4, %v377_v29  ;;  %v349_v43 = vadd.f32 %v335_v19, %v301_v35  ;;  %v197_v32 = vadd.f32 %v183_v28, %v168_v31  ;;  %v260_v47 = vmul.f32 %v963_v26, %v1294_v11  ;;  %v981_v4 = vld [vmem:[%s1279_s6 + $0x2b] sm:$0x1]  ;;  %v112_v35 = vld [vmem:[%s1279_s6 + $0xe] sm:$0x1]  ;;  %v982_v31 = vld [vmem:[%s1279_s6 + $0x2c] sm:$0x1] }
  0x6d   : > { %v365_v49 = vmul.f32 %v979_v24, %v1305_v16  ;;  %v394_v52 = vmul.f32 %v980_v46, %v1312_v21  ;;  %v140_v40 = vadd.f32 %v1277_v2, %v125_v41  ;;  %v184_v50 = vmul.f32 %v1284_v5, %v110_v48 }
  0x6e   : > { %422 = vst [vmem:[%s1370_s12 + $0x6] sm:$0x1] %v406_v38  ;;  %v378_v53 = vadd.f32 %v364_v30, %v349_v43  ;;  %v302_v54 = vadd.f32 %v288_v34, %v273_v44  ;;  %v245_v51 = vadd.f32 %v231_v37, %v197_v32  ;;  %v289_v55 = vmul.f32 %v964_v45, %v1298_v13  ;;  %v966_v38 = vld [vmem:[%s1279_s6 + $0x1d] sm:$0x1]  ;;  %v113_v32 = vld [vmem:[%s1279_s6 + $0xf] sm:$0x1] }
  0x6f   : > { %v169_v56 = vadd.f32 %v155_v42, %v140_v40  ;;  %v232_v57 = vmul.f32 %v963_v26, %v1287_v6  ;;  %v126_v58 = vmul.f32 %v1269_v0, %v109_v18  ;;  %v156_v59 = vmul.f32 %v1272_v1, %v110_v48 }
  0x70   : > { %v407_v60 = vadd.f32 %v393_v33, %v378_v53  ;;  %v350_v61 = vadd.f32 %v336_v39, %v302_v54  ;;  %v274_v62 = vadd.f32 %v260_v47, %v245_v51  ;;  %v337_v63 = vmul.f32 %v979_v24, %v1302_v15 }
  0x71   : > { %v198_v7 = vadd.f32 %v184_v50, %v169_v56  ;;  %v261_v8 = vmul.f32 %v964_v45, %v1294_v11  ;;  %v141_v9 = vadd.f32 %v1277_v2, %v126_v58  ;;  %v185_v10 = vmul.f32 %v1284_v5, %v111_v3 }
  0x72   : > { %423 = vst [vmem:[%s1370_s12 + $0x7] sm:$0x1] %v407_v60  ;;  %v379_v12 = vadd.f32 %v365_v49, %v350_v61  ;;  %v303_v14 = vadd.f32 %v289_v55, %v274_v62  ;;  %v366_v17 = vmul.f32 %v980_v46, %v1305_v16  ;;  %v395_v19 = vmul.f32 %v981_v4, %v1312_v21  ;;  %v983_v60 = vld [vmem:[%s1279_s6 + $0x2d] sm:$0x1] }
  0x73   : > { %v246_v18 = vadd.f32 %v232_v57, %v198_v7  ;;  %v290_v22 = vmul.f32 %v965_v20, %v1298_v13  ;;  %v170_v23 = vadd.f32 %v156_v59, %v141_v9  ;;  %v233_v24 = vmul.f32 %v964_v45, %v1287_v6  ;;  %v967_v59 = vld [vmem:[%s1279_s6 + $0x1e] sm:$0x1]  ;;  %v968_v7 = vld [vmem:[%s1279_s6 + $0x1f] sm:$0x1] }
  0x74   : > { %v408_v25 = vadd.f32 %v394_v52, %v379_v12  ;;  %v351_v26 = vadd.f32 %v337_v63, %v303_v14  ;;  %v127_v27 = vmul.f32 %v1269_v0, %v110_v48  ;;  %v157_v28 = vmul.f32 %v1272_v1, %v111_v3 }
  0x75   : > { %v275_v29 = vadd.f32 %v261_v8, %v246_v18  ;;  %v338_v30 = vmul.f32 %v980_v46, %v1302_v15  ;;  %v199_v33 = vadd.f32 %v185_v10, %v170_v23  ;;  %v262_v34 = vmul.f32 %v965_v20, %v1294_v11  ;;  %v984_v18 = vld [vmem:[%s1279_s6 + $0x2e] sm:$0x1] }
  0x76   : > { %424 = vst [vmem:[%s1370_s12 + $0x8] sm:$0x1] %v408_v25  ;;  %v380_v36 = vadd.f32 %v366_v17, %v351_v26  ;;  %v367_v37 = vmul.f32 %v981_v4, %v1305_v16  ;;  %v142_v39 = vadd.f32 %v1277_v2, %v127_v27  ;;  %v186_v41 = vmul.f32 %v1284_v5, %v112_v35 }
  0x77   : > { %v304_v42 = vadd.f32 %v290_v22, %v275_v29  ;;  %v396_v43 = vmul.f32 %v982_v31, %v1312_v21  ;;  %v247_v44 = vadd.f32 %v233_v24, %v199_v33  ;;  %v291_v46 = vmul.f32 %v966_v38, %v1298_v13 }
  0x78   : > { %v409_v47 = vadd.f32 %v395_v19, %v380_v36  ;;  %v171_v48 = vadd.f32 %v157_v28, %v142_v39  ;;  %v234_v49 = vmul.f32 %v965_v20, %v1287_v6  ;;  %v128_v52 = vmul.f32 %v1269_v0, %v111_v3 }
  0x79   : > { %v352_v45 = vadd.f32 %v338_v30, %v304_v42  ;;  %v276_v40 = vadd.f32 %v262_v34, %v247_v44  ;;  %v339_v50 = vmul.f32 %v981_v4, %v1302_v15  ;;  %v158_v53 = vmul.f32 %v1272_v1, %v112_v35 }
  0x7a   : > { %425 = vst [vmem:[%s1370_s12 + $0x9] sm:$0x1] %v409_v47  ;;  %v200_v54 = vadd.f32 %v186_v41, %v171_v48  ;;  %v263_v51 = vmul.f32 %v966_v38, %v1294_v11  ;;  %v143_v55 = vadd.f32 %v1277_v2, %v128_v52  ;;  %v187_v56 = vmul.f32 %v1284_v5, %v113_v32 }
  0x7b   : > { %v381_v57 = vadd.f32 %v367_v37, %v352_v45  ;;  %v305_v58 = vadd.f32 %v291_v46, %v276_v40  ;;  %v368_v0 = vmul.f32 %v982_v31, %v1305_v16  ;;  %v292_v62 = vmul.f32 %v967_v59, %v1298_v13 }
  0x7c   : > { %v248_v61 = vadd.f32 %v234_v49, %v200_v54  ;;  %v172_v1 = vadd.f32 %v158_v53, %v143_v55  ;;  %v235_v63 = vmul.f32 %v966_v38, %v1287_v6  ;;  %v397_v2 = vmul.f32 %v983_v60, %v1312_v21 }
  0x7d   : > { %v410_v3 = vadd.f32 %v396_v43, %v381_v57  ;;  %v353_v4 = vadd.f32 %v339_v50, %v305_v58  ;;  %v340_v8 = vmul.f32 %v982_v31, %v1302_v15  ;;  %v264_v10 = vmul.f32 %v967_v59, %v1294_v11  ;;  %v985_v11 = vld [vmem:[%s1279_s6 + $0x2f] sm:$0x1] }
  0x7e   : > { %v277_v5 = vadd.f32 %v263_v51, %v248_v61  ;;  %v201_v9 = vadd.f32 %v187_v56, %v172_v1  ;;  %v369_v17 = vmul.f32 %v983_v60, %v1305_v16  ;;  %v293_v19 = vmul.f32 %v968_v7, %v1298_v13 }
  0x7f   : > { %426 = vst [vmem:[%s1370_s12 + $0xa] sm:$0x1] %v410_v3  ;;  %v382_v12 = vadd.f32 %v368_v0, %v353_v4  ;;  %v398_v23 = vmul.f32 %v984_v18, %v1312_v21  ;;  %v341_v25 = vmul.f32 %v983_v60, %v1302_v15  ;;  %v370_v28 = vmul.f32 %v984_v18, %v1305_v16 }
  0x80   : > { %v306_v14 = vadd.f32 %v292_v62, %v277_v5  ;;  %v249_v6 = vadd.f32 %v235_v63, %v201_v9  ;;  %v399_v33 = vmul.f32 %v985_v11, %v1312_v21 }
  0x81   : > { %v411_v20 = vadd.f32 %v397_v2, %v382_v12 }
  0x82   : > { %v354_v22 = vadd.f32 %v340_v8, %v306_v14  ;;  %v278_v24 = vadd.f32 %v264_v10, %v249_v6 }
  0x83   : > { %427 = vst [vmem:[%s1370_s12 + $0xb] sm:$0x1] %v411_v20 }
  0x84   : > { %v383_v26 = vadd.f32 %v369_v17, %v354_v22  ;;  %v307_v27 = vadd.f32 %v293_v19, %v278_v24 }
  0x86   : > { %v412_v29 = vadd.f32 %v398_v23, %v383_v26  ;;  %v355_v30 = vadd.f32 %v341_v25, %v307_v27 }
  0x88   : > { %428 = vst [vmem:[%s1370_s12 + $0xc] sm:$0x1] %v412_v29  ;;  %v384_v13 = vadd.f32 %v370_v28, %v355_v30  ;;  %94 = sbr.rel (!%p92_p6) target bundleno = 64 (0x40), region = 96 }
  0x8a   : > { %v413_v34 = vadd.f32 %v399_v33, %v384_v13 }
  0x8c   : > { %429 = vst [vmem:[%s1370_s12 + $0xd] sm:$0x1] %v413_v34 }
  0x8d LB: > { %s446_s1 = smul.u32 14, %s1170_s2  ;;  %v1539_v15 = vstv %s1512_s13  ;;  %v1542_v16 = vstv %s1514_s14  ;;  %v1545_v21 = vstv %s1530_s0  ;;  %v1552_v31 = vstv %s1516_s15  ;;  %s1170_s2 = sphi %s1532_s2, %s445_s2  }
  0x8e   : > { %v1555_v37 = vstv %s1518_s16  ;;  %v1562_v43 = vstv %s1520_s17  ;;  %v1566_v46 = vstv %s1522_s18  ;;  %v1570_v47 = vstv %s1524_s19  ;;  %s722_s22 = smul.u32 12, %s1170_s2  ;;  %s445_s2 = sadd.s32 1, %s1170_s2  }
  0x8f   : > { %s1547_s5 = scalar_lea.vmem [#allocation2], %s446_s1  ;;  %v1573_v48 = vstv %s1526_s20  ;;  %v1580_v50 = vstv %s1528_s21  ;;  %p442_p7 = scmp.ge.s32.totalorder %s445_s2, 12  }
  0x90   : > { %s1638_s23 = scalar_lea.vmem [#allocation3], %s722_s22  ;;  %s1752_s24 = sld [smem:[#allocation14]] (%p442_p7) }
  0x91   :  { %s1754_s25 = sld [smem:[#allocation14 + $0x1]] (%p442_p7)  ;;  %s1762_s29 = smov (%p442_p7), 0  }
  0x92   :  { %s1756_s26 = sld [smem:[#allocation14 + $0x2]] (%p442_p7) }
  0x93   : > { %v448_v35 = vld [vmem:[%s1547_s5] sm:$0x1]  ;;  %v449_v36 = vld [vmem:[%s1547_s5 + $0x1] sm:$0x1]  ;;  %v450_v38 = vld [vmem:[%s1547_s5 + $0x2] sm:$0x1] }
  0x94   : > { %v463_v39 = vmul.f32 %v1539_v15, %v448_v35  ;;  %v489_v41 = vmul.f32 %v1542_v16, %v449_v36  ;;  %v994_v42 = vld [vmem:[%s1547_s5 + $0xe] sm:$0x1]  ;;  %v464_v44 = vmul.f32 %v1539_v15, %v449_v36  ;;  %v1008_v32 = vld [vmem:[%s1547_s5 + $0x1c] sm:$0x1]  ;;  %v490_v49 = vmul.f32 %v1542_v16, %v450_v38  ;;  %v995_v40 = vld [vmem:[%s1547_s5 + $0xf] sm:$0x1] }
  0x95   : > { %v514_v45 = vmul.f32 %v1552_v31, %v450_v38  ;;  %v451_v53 = vld [vmem:[%s1547_s5 + $0x3] sm:$0x1]  ;;  %v996_v54 = vld [vmem:[%s1547_s5 + $0x10] sm:$0x1]  ;;  %v556_v51 = vmul.f32 %v994_v42, %v1555_v37  ;;  %v581_v55 = vmul.f32 %v995_v40, %v1562_v43  ;;  %v1009_v56 = vld [vmem:[%s1547_s5 + $0x1d] sm:$0x1]  ;;  %v648_v60 = vmul.f32 %v1008_v32, %v1570_v47 }
  0x96   : > { %v476_v52 = vadd.f32 %v1545_v21, %v463_v39  ;;  %v477_v57 = vadd.f32 %v1545_v21, %v464_v44  ;;  %v515_v58 = vmul.f32 %v1552_v31, %v451_v53  ;;  %v606_v59 = vmul.f32 %v996_v54, %v1566_v46  ;;  %v1010_v62 = vld [vmem:[%s1547_s5 + $0x1e] sm:$0x1]  ;;  %v997_v63 = vld [vmem:[%s1547_s5 + $0x11] sm:$0x1]  ;;  %v452_v10 = vld [vmem:[%s1547_s5 + $0x4] sm:$0x1] }
  0x97   : > { %v673_v61 = vmul.f32 %v1009_v56, %v1573_v48  ;;  %v557_v3 = vmul.f32 %v995_v40, %v1555_v37  ;;  %v465_v4 = vmul.f32 %v1539_v15, %v450_v38  ;;  %v491_v2 = vmul.f32 %v1542_v16, %v451_v53  ;;  %v1011_v14 = vld [vmem:[%s1547_s5 + $0x1f] sm:$0x1]  ;;  %v453_v26 = vld [vmem:[%s1547_s5 + $0x5] sm:$0x1]  ;;  %v998_v29 = vld [vmem:[%s1547_s5 + $0x12] sm:$0x1] }
  0x98   : > { %v501_v0 = vadd.f32 %v489_v41, %v476_v52  ;;  %v502_v1 = vadd.f32 %v490_v49, %v477_v57  ;;  %v698_v5 = vmul.f32 %v1010_v62, %v1580_v50  ;;  %v582_v8 = vmul.f32 %v996_v54, %v1562_v43  ;;  %v1012_v52 = vld [vmem:[%s1547_s5 + $0x20] sm:$0x1]  ;;  %s1758_s27 = sld [smem:[#allocation14 + $0x3]] (%p442_p7) }
  0x99   : > { %v607_v9 = vmul.f32 %v997_v63, %v1566_v46  ;;  %v649_v17 = vmul.f32 %v1009_v56, %v1570_v47  ;;  %v478_v6 = vadd.f32 %v1545_v21, %v465_v4  ;;  %v516_v19 = vmul.f32 %v1552_v31, %v452_v10  ;;  %v454_v56 = vld [vmem:[%s1547_s5 + $0x6] sm:$0x1]  ;;  %s1760_s28 = sld [smem:[#allocation6]] (%p442_p7) }
  0x9a   : > { %v526_v7 = vadd.f32 %v514_v45, %v501_v0  ;;  %v527_v12 = vadd.f32 %v515_v58, %v502_v1  ;;  %v674_v18 = vmul.f32 %v1010_v62, %v1573_v48  ;;  %v699_v22 = vmul.f32 %v1011_v14, %v1580_v50  ;;  %v999_v0 = vld [vmem:[%s1547_s5 + $0x13] sm:$0x1] }
  0x9b   : > { %v466_v23 = vmul.f32 %v1539_v15, %v451_v53  ;;  %v503_v25 = vadd.f32 %v491_v2, %v478_v6  ;;  %v558_v11 = vmul.f32 %v996_v54, %v1555_v37  ;;  %v492_v27 = vmul.f32 %v1542_v16, %v452_v10 }
  0x9c   : > { %v568_v20 = vadd.f32 %v556_v51, %v526_v7  ;;  %v569_v24 = vadd.f32 %v557_v3, %v527_v12  ;;  %v583_v30 = vmul.f32 %v997_v63, %v1562_v43  ;;  %v517_v13 = vmul.f32 %v1552_v31, %v453_v26 }
  0x9d   : > { %v479_v33 = vadd.f32 %v1545_v21, %v466_v23  ;;  %v528_v35 = vadd.f32 %v516_v19, %v503_v25  ;;  %v608_v36 = vmul.f32 %v998_v29, %v1566_v46  ;;  %v650_v38 = vmul.f32 %v1010_v62, %v1570_v47 }
  0x9e   : > { %v593_v28 = vadd.f32 %v581_v55, %v568_v20  ;;  %v594_v34 = vadd.f32 %v582_v8, %v569_v24  ;;  %v675_v41 = vmul.f32 %v1011_v14, %v1573_v48  ;;  %v559_v44 = vmul.f32 %v997_v63, %v1555_v37  ;;  %v455_v20 = vld [vmem:[%s1547_s5 + $0x7] sm:$0x1] }
  0x9f   : > { %v504_v42 = vadd.f32 %v492_v27, %v479_v33  ;;  %v570_v49 = vadd.f32 %v558_v11, %v528_v35  ;;  %v467_v45 = vmul.f32 %v1539_v15, %v452_v10  ;;  %v493_v40 = vmul.f32 %v1542_v16, %v453_v26  ;;  %v1013_v11 = vld [vmem:[%s1547_s5 + $0x21] sm:$0x1] }
  0xa0   : > { %v618_v39 = vadd.f32 %v606_v59, %v593_v28  ;;  %v619_v32 = vadd.f32 %v607_v9, %v594_v34  ;;  %v700_v54 = vmul.f32 %v1012_v52, %v1580_v50  ;;  %v584_v55 = vmul.f32 %v998_v29, %v1562_v43 }
  0xa1   : > { %v529_v51 = vadd.f32 %v517_v13, %v504_v42  ;;  %v595_v58 = vadd.f32 %v583_v30, %v570_v49  ;;  %v480_v59 = vadd.f32 %v1545_v21, %v467_v45  ;;  %v518_v62 = vmul.f32 %v1552_v31, %v454_v56  ;;  %v456_v42 = vld [vmem:[%s1547_s5 + $0x8] sm:$0x1]  ;;  %v1001_v45 = vld [vmem:[%s1547_s5 + $0x15] sm:$0x1] }
  0xa2   : > { %v660_v53 = vadd.f32 %v648_v60, %v618_v39  ;;  %v661_v57 = vadd.f32 %v649_v17, %v619_v32  ;;  %v609_v3 = vmul.f32 %v999_v0, %v1566_v46  ;;  %v651_v60 = vmul.f32 %v1011_v14, %v1570_v47 }
  0xa3   : > { %v571_v63 = vadd.f32 %v559_v44, %v529_v51  ;;  %v620_v2 = vadd.f32 %v608_v36, %v595_v58  ;;  %v505_v7 = vadd.f32 %v493_v40, %v480_v59  ;;  %v560_v8 = vmul.f32 %v998_v29, %v1555_v37 }
  0xa4   : > { %v685_v1 = vadd.f32 %v673_v61, %v660_v53  ;;  %v686_v4 = vadd.f32 %v674_v18, %v661_v57  ;;  %v585_v12 = vmul.f32 %v999_v0, %v1562_v43  ;;  %v468_v17 = vmul.f32 %v1539_v15, %v453_v26  ;;  %v1000_v18 = vld [vmem:[%s1547_s5 + $0x14] sm:$0x1] }
  0xa5   : > { %v596_v10 = vadd.f32 %v584_v55, %v571_v63  ;;  %v662_v6 = vadd.f32 %v650_v38, %v620_v2  ;;  %v530_v19 = vadd.f32 %v518_v62, %v505_v7  ;;  %v494_v23 = vmul.f32 %v1542_v16, %v454_v56 }
  0xa6   : > { %v710_v9 = vadd.f32 %v698_v5, %v685_v1  ;;  %v711_v61 = vadd.f32 %v699_v22, %v686_v4  ;;  %v676_v5 = vmul.f32 %v1012_v52, %v1573_v48  ;;  %v481_v24 = vadd.f32 %v1545_v21, %v468_v17 }
  0xa7   : > { %v621_v14 = vadd.f32 %v609_v3, %v596_v10  ;;  %v519_v25 = vmul.f32 %v1552_v31, %v455_v20  ;;  %v687_v22 = vadd.f32 %v675_v41, %v662_v6  ;;  %v572_v26 = vadd.f32 %v560_v8, %v530_v19  ;;  %v457_v8 = vld [vmem:[%s1547_s5 + $0x9] sm:$0x1] }
  0xa8   : > { %724 = vst [vmem:[%s1638_s23] sm:$0x1] %v710_v9  ;;  %725 = vst [vmem:[%s1638_s23 + $0x1] sm:$0x1] %v711_v61  ;;  %v610_v27 = vmul.f32 %v1000_v18, %v1566_v46  ;;  %v701_v29 = vmul.f32 %v1013_v11, %v1580_v50  ;;  %v506_v30 = vadd.f32 %v494_v23, %v481_v24 }
  0xa9   : > { %v663_v28 = vadd.f32 %v651_v60, %v621_v14  ;;  %v561_v33 = vmul.f32 %v999_v0, %v1555_v37  ;;  %v712_v13 = vadd.f32 %v700_v54, %v687_v22  ;;  %v597_v34 = vadd.f32 %v585_v12, %v572_v26  ;;  %v1014_v54 = vld [vmem:[%s1547_s5 + $0x22] sm:$0x1]  ;;  %v1015_v60 = vld [vmem:[%s1547_s5 + $0x23] sm:$0x1]  ;;  %v1002_v12 = vld [vmem:[%s1547_s5 + $0x16] sm:$0x1] }
  0xaa   : > { %v652_v35 = vmul.f32 %v1012_v52, %v1570_v47  ;;  %v469_v36 = vmul.f32 %v1539_v15, %v454_v56  ;;  %v531_v39 = vadd.f32 %v519_v25, %v506_v30  ;;  %v586_v41 = vmul.f32 %v1000_v18, %v1562_v43 }
  0xab   : > { %v688_v38 = vadd.f32 %v676_v5, %v663_v28  ;;  %v495_v44 = vmul.f32 %v1542_v16, %v455_v20  ;;  %726 = vst [vmem:[%s1638_s23 + $0x2] sm:$0x1] %v712_v13  ;;  %v622_v32 = vadd.f32 %v610_v27, %v597_v34  ;;  %v677_v49 = vmul.f32 %v1013_v11, %v1573_v48  ;;  %v458_v27 = vld [vmem:[%s1547_s5 + $0xa] sm:$0x1] }
  0xac   : > { %v482_v40 = vadd.f32 %v1545_v21, %v469_v36  ;;  %v520_v52 = vmul.f32 %v1552_v31, %v456_v42  ;;  %v573_v51 = vadd.f32 %v561_v33, %v531_v39  ;;  %v611_v55 = vmul.f32 %v1001_v45, %v1566_v46  ;;  %v1003_v33 = vld [vmem:[%s1547_s5 + $0x17] sm:$0x1] }
  0xad   : > { %v713_v53 = vadd.f32 %v701_v29, %v688_v38  ;;  %v664_v56 = vadd.f32 %v652_v35, %v622_v32  ;;  %v702_v57 = vmul.f32 %v1014_v54, %v1580_v50  ;;  %v562_v0 = vmul.f32 %v1000_v18, %v1555_v37  ;;  %v1016_v29 = vld [vmem:[%s1547_s5 + $0x24] sm:$0x1] }
  0xae   : > { %v507_v58 = vadd.f32 %v495_v44, %v482_v40  ;;  %v598_v59 = vadd.f32 %v586_v41, %v573_v51  ;;  %v653_v62 = vmul.f32 %v1013_v11, %v1570_v47  ;;  %v470_v1 = vmul.f32 %v1539_v15, %v455_v20  ;;  %v1017_v51 = vld [vmem:[%s1547_s5 + $0x25] sm:$0x1] }
  0xaf   : > { %727 = vst [vmem:[%s1638_s23 + $0x3] sm:$0x1] %v713_v53  ;;  %v496_v63 = vmul.f32 %v1542_v16, %v456_v42  ;;  %v689_v3 = vadd.f32 %v677_v49, %v664_v56  ;;  %v678_v4 = vmul.f32 %v1014_v54, %v1573_v48  ;;  %v587_v7 = vmul.f32 %v1001_v45, %v1562_v43  ;;  %v1004_v56 = vld [vmem:[%s1547_s5 + $0x18] sm:$0x1] }
  0xb0   : > { %v532_v2 = vadd.f32 %v520_v52, %v507_v58  ;;  %v623_v9 = vadd.f32 %v611_v55, %v598_v59  ;;  %v703_v10 = vmul.f32 %v1015_v60, %v1580_v50  ;;  %v483_v17 = vadd.f32 %v1545_v21, %v470_v1  ;;  %v459_v52 = vld [vmem:[%s1547_s5 + $0xb] sm:$0x1] }
  0xb1   : > { %v521_v61 = vmul.f32 %v1552_v31, %v457_v8  ;;  %v714_v6 = vadd.f32 %v702_v57, %v689_v3  ;;  %v612_v20 = vmul.f32 %v1002_v12, %v1566_v46  ;;  %v563_v23 = vmul.f32 %v1001_v45, %v1555_v37 }
  0xb2   : > { %v574_v19 = vadd.f32 %v562_v0, %v532_v2  ;;  %v665_v14 = vadd.f32 %v653_v62, %v623_v9  ;;  %v508_v5 = vadd.f32 %v496_v63, %v483_v17  ;;  %v471_v18 = vmul.f32 %v1539_v15, %v456_v42  ;;  %v1018_v17 = vld [vmem:[%s1547_s5 + $0x26] sm:$0x1] }
  0xb3   : > { %v497_v24 = vmul.f32 %v1542_v16, %v457_v8  ;;  %728 = vst [vmem:[%s1638_s23 + $0x4] sm:$0x1] %v714_v6  ;;  %v654_v22 = vmul.f32 %v1014_v54, %v1570_v47  ;;  %v679_v11 = vmul.f32 %v1015_v60, %v1573_v48  ;;  %v588_v26 = vmul.f32 %v1002_v12, %v1562_v43 }
  0xb4   : > { %v599_v25 = vadd.f32 %v587_v7, %v574_v19  ;;  %v690_v28 = vadd.f32 %v678_v4, %v665_v14  ;;  %v533_v30 = vadd.f32 %v521_v61, %v508_v5  ;;  %v484_v13 = vadd.f32 %v1545_v21, %v471_v18  ;;  %v460_v19 = vld [vmem:[%s1547_s5 + $0xc] sm:$0x1]  ;;  %v1005_v14 = vld [vmem:[%s1547_s5 + $0x19] sm:$0x1] }
  0xb5   : > { %v522_v34 = vmul.f32 %v1552_v31, %v458_v27  ;;  %v704_v36 = vmul.f32 %v1016_v29, %v1580_v50  ;;  %v613_v38 = vmul.f32 %v1003_v33, %v1566_v46  ;;  %v564_v39 = vmul.f32 %v1002_v12, %v1555_v37 }
  0xb6   : > { %v624_v35 = vadd.f32 %v612_v20, %v599_v25  ;;  %v715_v41 = vadd.f32 %v703_v10, %v690_v28  ;;  %v575_v42 = vadd.f32 %v563_v23, %v533_v30  ;;  %v509_v44 = vadd.f32 %v497_v24, %v484_v13 }
  0xb7   : > { %v472_v32 = vmul.f32 %v1539_v15, %v457_v8  ;;  %v655_v45 = vmul.f32 %v1015_v60, %v1570_v47  ;;  %v589_v40 = vmul.f32 %v1003_v33, %v1562_v43  ;;  %v498_v53 = vmul.f32 %v1542_v16, %v458_v27 }
  0xb8   : > { %v666_v49 = vadd.f32 %v654_v22, %v624_v35  ;;  %729 = vst [vmem:[%s1638_s23 + $0x5] sm:$0x1] %v715_v41  ;;  %v600_v54 = vadd.f32 %v588_v26, %v575_v42  ;;  %v534_v55 = vadd.f32 %v522_v34, %v509_v44  ;;  %v523_v58 = vmul.f32 %v1552_v31, %v459_v52  ;;  %v461_v26 = vld [vmem:[%s1547_s5 + $0xd] sm:$0x1] }
  0xb9   : > { %v485_v57 = vadd.f32 %v1545_v21, %v472_v32  ;;  %v680_v59 = vmul.f32 %v1016_v29, %v1573_v48  ;;  %v705_v62 = vmul.f32 %v1017_v51, %v1580_v50  ;;  %v614_v1 = vmul.f32 %v1004_v56, %v1566_v46  ;;  %v1019_v32 = vld [vmem:[%s1547_s5 + $0x27] sm:$0x1] }
  0xba   : > { %v691_v0 = vadd.f32 %v679_v11, %v666_v49  ;;  %v625_v63 = vadd.f32 %v613_v38, %v600_v54  ;;  %v576_v3 = vadd.f32 %v564_v39, %v534_v55  ;;  %v565_v4 = vmul.f32 %v1003_v33, %v1555_v37 }
  0xbb   : > { %v510_v60 = vadd.f32 %v498_v53, %v485_v57  ;;  %v656_v7 = vmul.f32 %v1016_v29, %v1570_v47  ;;  %v473_v8 = vmul.f32 %v1539_v15, %v458_v27  ;;  %v499_v9 = vmul.f32 %v1542_v16, %v459_v52 }
  0xbc   : > { %v716_v2 = vadd.f32 %v704_v36, %v691_v0  ;;  %v667_v10 = vadd.f32 %v655_v45, %v625_v63  ;;  %v601_v12 = vadd.f32 %v589_v40, %v576_v3  ;;  %v590_v6 = vmul.f32 %v1004_v56, %v1562_v43  ;;  %v1020_v63 = vld [vmem:[%s1547_s5 + $0x28] sm:$0x1] }
  0xbd   : > { %v535_v61 = vadd.f32 %v523_v58, %v510_v60  ;;  %v681_v20 = vmul.f32 %v1017_v51, %v1573_v48  ;;  %v706_v23 = vmul.f32 %v1018_v17, %v1580_v50  ;;  %v486_v5 = vadd.f32 %v1545_v21, %v473_v8 }
  0xbe   : > { %730 = vst [vmem:[%s1638_s23 + $0x6] sm:$0x1] %v716_v2  ;;  %v524_v18 = vmul.f32 %v1552_v31, %v460_v19  ;;  %v692_v24 = vadd.f32 %v680_v59, %v667_v10  ;;  %v626_v25 = vadd.f32 %v614_v1, %v601_v12  ;;  %v615_v11 = vmul.f32 %v1005_v14, %v1566_v46 }
  0xbf   : > { %v577_v22 = vadd.f32 %v565_v4, %v535_v61  ;;  %v511_v27 = vadd.f32 %v499_v9, %v486_v5  ;;  %v566_v28 = vmul.f32 %v1004_v56, %v1555_v37  ;;  %v474_v29 = vmul.f32 %v1539_v15, %v459_v52 }
  0xc0   : > { %v500_v30 = vmul.f32 %v1542_v16, %v460_v19  ;;  %v717_v33 = vadd.f32 %v705_v62, %v692_v24  ;;  %v668_v13 = vadd.f32 %v656_v7, %v626_v25  ;;  %v657_v35 = vmul.f32 %v1017_v51, %v1570_v47  ;;  %v1006_v16 = vld [vmem:[%s1547_s5 + $0x1a] sm:$0x1] }
  0xc1   : > { %v602_v34 = vadd.f32 %v590_v6, %v577_v22  ;;  %v536_v36 = vadd.f32 %v524_v18, %v511_v27  ;;  %v591_v38 = vmul.f32 %v1005_v14, %v1562_v43  ;;  %v487_v39 = vadd.f32 %v1545_v21, %v474_v29 }
  0xc2   : > { %v525_v41 = vmul.f32 %v1552_v31, %v461_v26  ;;  %731 = vst [vmem:[%s1638_s23 + $0x7] sm:$0x1] %v717_v33  ;;  %v693_v42 = vadd.f32 %v681_v20, %v668_v13  ;;  %v682_v15 = vmul.f32 %v1018_v17, %v1573_v48  ;;  %v616_v45 = vmul.f32 %v1006_v16, %v1566_v46  ;;  %v1007_v31 = vld [vmem:[%s1547_s5 + $0x1b] sm:$0x1] }
  0xc3   : > { %v627_v44 = vadd.f32 %v615_v11, %v602_v34  ;;  %v578_v49 = vadd.f32 %v566_v28, %v536_v36  ;;  %v512_v40 = vadd.f32 %v500_v30, %v487_v39  ;;  %v567_v52 = vmul.f32 %v1005_v14, %v1555_v37 }
  0xc4   : > { %v718_v53 = vadd.f32 %v706_v23, %v693_v42  ;;  %v707_v21 = vmul.f32 %v1019_v32, %v1580_v50  ;;  %v658_v55 = vmul.f32 %v1018_v17, %v1570_v47  ;;  %v592_v57 = vmul.f32 %v1006_v16, %v1562_v43  ;;  %v1021_v43 = vld [vmem:[%s1547_s5 + $0x29] sm:$0x1] }
  0xc5   : > { %v669_v54 = vadd.f32 %v657_v35, %v627_v44  ;;  %v603_v51 = vadd.f32 %v591_v38, %v578_v49  ;;  %v537_v56 = vadd.f32 %v525_v41, %v512_v40  ;;  %v683_v59 = vmul.f32 %v1019_v32, %v1573_v48 }
  0xc6   : > { %732 = vst [vmem:[%s1638_s23 + $0x8] sm:$0x1] %v718_v53  ;;  %v617_v62 = vmul.f32 %v1007_v31, %v1566_v46  ;;  %v708_v60 = vmul.f32 %v1020_v63, %v1580_v50  ;;  %v659_v2 = vmul.f32 %v1019_v32, %v1570_v47  ;;  %v684_v9 = vmul.f32 %v1020_v63, %v1573_v48 }
  0xc7   : > { %v694_v58 = vadd.f32 %v682_v15, %v669_v54  ;;  %v628_v0 = vadd.f32 %v616_v45, %v603_v51  ;;  %v579_v37 = vadd.f32 %v567_v52, %v537_v56  ;;  %v709_v17 = vmul.f32 %v1021_v43, %v1580_v50 }
  0xc9   : > { %v719_v1 = vadd.f32 %v707_v21, %v694_v58  ;;  %v670_v3 = vadd.f32 %v658_v55, %v628_v0  ;;  %v604_v4 = vadd.f32 %v592_v57, %v579_v37 }
  0xcb   : > { %733 = vst [vmem:[%s1638_s23 + $0x9] sm:$0x1] %v719_v1  ;;  %v695_v7 = vadd.f32 %v683_v59, %v670_v3  ;;  %v629_v8 = vadd.f32 %v617_v62, %v604_v4 }
  0xcd   : > { %v720_v10 = vadd.f32 %v708_v60, %v695_v7  ;;  %v671_v12 = vadd.f32 %v659_v2, %v629_v8 }
  0xcf   : > { %734 = vst [vmem:[%s1638_s23 + $0xa] sm:$0x1] %v720_v10  ;;  %v696_v46 = vadd.f32 %v684_v9, %v671_v12  ;;  %444 = sbr.rel (!%p442_p7) target bundleno = 141 (0x8d), region = 107 }
  0xd1   : > { %v721_v61 = vadd.f32 %v709_v17, %v696_v46 }
  0xd3   : > { %735 = vst [vmem:[%s1638_s23 + $0xb] sm:$0x1] %v721_v61 }
  0xd4 LB: > { %s747_s30 = smul.u32 12, %s1174_s29  ;;  %v1769_v47 = vstv %s1752_s24  ;;  %v1772_v48 = vstv %s1754_s25  ;;  %v1775_v50 = vstv %s1756_s26  ;;  %v1778_v6 = vstv %s1758_s27  ;;  %s1174_s29 = sphi %s1762_s29, %s746_s29  }
  0xd5   : > { %v1785_v23 = vstv %s1760_s28  ;;  %s869_s4 = smul.u32 11, %s1174_s29  ;;  %s746_s29 = sadd.s32 1, %s1174_s29  }
  0xd6   : > { %s1780_s8 = scalar_lea.vmem [#allocation3], %s747_s30  ;;  %p743_p8 = scmp.ge.s32.totalorder %s746_s29, 11  }
  0xd7   : > { %s1830_s9 = scalar_lea.vmem [#allocation15], %s869_s4  ;;  %s1182_s6 = smov (%p743_p8), [#allocation15]  }
  0xd8   :  { %s887_s10 = sshll.u32 (%p743_p8), %s1182_s6, 4  ;;  %s888_s10 = int_to_ptr.vmem [resolvable:$true] %s887_s10 }
  0xd9   :  { %s1124_s12 = scalar_lea.vmem (%p743_p8), %s888_s10, 1936  ;;  %s1128_s13 = scalar_lea.vmem (%p743_p8), %s888_s10, 1952 }
  0xda   : > { %v749_v19 = vld [vmem:[%s1780_s8] sm:$0x1]  ;;  %v750_v20 = vld [vmem:[%s1780_s8 + $0x1] sm:$0x1]  ;;  %v1025_v14 = vld [vmem:[%s1780_s8 + $0xc] sm:$0x1]  ;;  %p1125_p9 = scmp.ne.s32.totalorder (%p743_p8), %s888_s10, %s1124_s12  ;;  %p1129_p10 = scmp.lt.s32.totalorder (%p743_p8), %s888_s10, %s888_s10 }
  0xdb   : > { %v762_v5 = vmul.f32 %v1769_v47, %v749_v19  ;;  %v786_v18 = vmul.f32 %v1772_v48, %v750_v20  ;;  %v1026_v24 = vld [vmem:[%s1780_s8 + $0xd] sm:$0x1]  ;;  %v751_v25 = vld [vmem:[%s1780_s8 + $0x2] sm:$0x1]  ;;  %v763_v22 = vmul.f32 %v1769_v47, %v750_v20  ;;  %v824_v11 = vmul.f32 %v1025_v14, %v1775_v50  ;;  %v1027_v28 = vld [vmem:[%s1780_s8 + $0xe] sm:$0x1]  ;;  %p1130_p11 = scmp.lt.s32.totalorder (%p743_p8), %s1128_s13, %s1124_s12 }
  0xdc   : > { %v847_v26 = vmul.f32 %v1026_v24, %v1778_v6  ;;  %v787_v27 = vmul.f32 %v1772_v48, %v751_v25  ;;  %v752_v29 = vld [vmem:[%s1780_s8 + $0x3] sm:$0x1]  ;;  %v764_v30 = vmul.f32 %v1769_v47, %v751_v25  ;;  %v825_v34 = vmul.f32 %v1026_v24, %v1775_v50  ;;  %v1028_v36 = vld [vmem:[%s1780_s8 + $0xf] sm:$0x1]  ;;  %v753_v38 = vld [vmem:[%s1780_s8 + $0x4] sm:$0x1] }
  0xdd   : > { %v774_v33 = vadd.f32 %v1785_v23, %v762_v5  ;;  %v775_v13 = vadd.f32 %v1785_v23, %v763_v22  ;;  %v788_v35 = vmul.f32 %v1772_v48, %v752_v29  ;;  %v848_v39 = vmul.f32 %v1027_v28, %v1778_v6  ;;  %v1029_v45 = vld [vmem:[%s1780_s8 + $0x10] sm:$0x1]  ;;  %v754_v54 = vld [vmem:[%s1780_s8 + $0x5] sm:$0x1]  ;;  %v1030_v59 = vld [vmem:[%s1780_s8 + $0x11] sm:$0x1]  ;;  %p1131_p12 = por (%p743_p8), %p1130_p11, %p1129_p10 }
  0xde   : > { %v776_v41 = vadd.f32 %v1785_v23, %v764_v30  ;;  %v826_v42 = vmul.f32 %v1027_v28, %v1775_v50  ;;  %v765_v44 = vmul.f32 %v1769_v47, %v752_v29  ;;  %v849_v32 = vmul.f32 %v1028_v36, %v1778_v6  ;;  %v755_v62 = vld [vmem:[%s1780_s8 + $0x6] sm:$0x1]  ;;  %v1031_v4 = vld [vmem:[%s1780_s8 + $0x12] sm:$0x1]  ;;  %v756_v9 = vld [vmem:[%s1780_s8 + $0x7] sm:$0x1] }
  0xdf   : > { %v797_v15 = vadd.f32 %v786_v18, %v774_v33  ;;  %v798_v16 = vadd.f32 %v787_v27, %v775_v13  ;;  %v789_v49 = vmul.f32 %v1772_v48, %v753_v38  ;;  %v827_v53 = vmul.f32 %v1028_v36, %v1775_v50  ;;  %v1032_v61 = vld [vmem:[%s1780_s8 + $0x13] sm:$0x1]  ;;  %v757_v19 = vld [vmem:[%s1780_s8 + $0x8] sm:$0x1]  ;;  %v758_v27 = vld [vmem:[%s1780_s8 + $0x9] sm:$0x1]  ;;  %p1132_p13 = pnand (%p743_p8), %p1131_p12, %p1125_p9 }
  0xe0   : > { %v799_v40 = vadd.f32 %v788_v35, %v776_v41  ;;  %v777_v52 = vadd.f32 %v1785_v23, %v765_v44  ;;  %v766_v21 = vmul.f32 %v1769_v47, %v753_v38  ;;  %v850_v55 = vmul.f32 %v1029_v45, %v1778_v6  ;;  %v1034_v38 = vld [vmem:[%s1780_s8 + $0x15] sm:$0x1]  ;;  %v759_v44 = vld [vmem:[%s1780_s8 + $0xa] sm:$0x1] }
  0xe1   : > { %v835_v31 = vadd.f32 %v824_v11, %v797_v15  ;;  %v836_v51 = vadd.f32 %v825_v34, %v798_v16  ;;  %v790_v56 = vmul.f32 %v1772_v48, %v754_v54  ;;  %v828_v37 = vmul.f32 %v1029_v45, %v1775_v50  ;;  %v760_v16 = vld [vmem:[%s1780_s8 + $0xb] sm:$0x1] }
  0xe2   : > { %v837_v57 = vadd.f32 %v826_v42, %v799_v40  ;;  %v800_v58 = vadd.f32 %v789_v49, %v777_v52  ;;  %v778_v0 = vadd.f32 %v1785_v23, %v766_v21  ;;  %v767_v3 = vmul.f32 %v1769_v47, %v754_v54  ;;  %v1035_v21 = vld [vmem:[%s1780_s8 + $0x16] sm:$0x1] }
  0xe3   : > { %v858_v1 = vadd.f32 %v847_v26, %v835_v31  ;;  %v859_v63 = vadd.f32 %v848_v39, %v836_v51  ;;  %v791_v60 = vmul.f32 %v1772_v48, %v755_v62  ;;  %v851_v8 = vmul.f32 %v1030_v59, %v1778_v6  ;;  %v1033_v26 = vld [vmem:[%s1780_s8 + $0x14] sm:$0x1] }
  0xe4   : > { %v860_v2 = vadd.f32 %v849_v32, %v837_v57  ;;  %v838_v43 = vadd.f32 %v827_v53, %v800_v58  ;;  %v801_v7 = vadd.f32 %v790_v56, %v778_v0  ;;  %v779_v10 = vadd.f32 %v1785_v23, %v767_v3 }
  0xe5   : > { %871 = vst [vmem:[%s1830_s9] sm:$0x1] %v858_v1  ;;  %872 = vst [vmem:[%s1830_s9 + $0x1] sm:$0x1] %v859_v63  ;;  %v829_v12 = vmul.f32 %v1030_v59, %v1775_v50  ;;  %v768_v17 = vmul.f32 %v1769_v47, %v755_v62  ;;  %v792_v46 = vmul.f32 %v1772_v48, %v756_v9 }
  0xe6   : > { %873 = vst [vmem:[%s1830_s9 + $0x2] sm:$0x1] %v860_v2  ;;  %v861_v20 = vadd.f32 %v850_v55, %v838_v43  ;;  %v839_v14 = vadd.f32 %v828_v37, %v801_v7  ;;  %v852_v5 = vmul.f32 %v1031_v4, %v1778_v6  ;;  %v830_v18 = vmul.f32 %v1031_v4, %v1775_v50  ;;  %v1036_v37 = vld [vmem:[%s1780_s8 + $0x17] sm:$0x1] }
  0xe7   : > { %v802_v24 = vadd.f32 %v791_v60, %v779_v10  ;;  %v780_v25 = vadd.f32 %v1785_v23, %v768_v17  ;;  %v769_v22 = vmul.f32 %v1769_v47, %v756_v9  ;;  %v793_v11 = vmul.f32 %v1772_v48, %v757_v19 }
  0xe8   : > { %874 = vst [vmem:[%s1830_s9 + $0x3] sm:$0x1] %v861_v20  ;;  %v862_v28 = vadd.f32 %v851_v8, %v839_v14  ;;  %v853_v29 = vmul.f32 %v1032_v61, %v1778_v6  ;;  %v831_v30 = vmul.f32 %v1032_v61, %v1775_v50  ;;  %v770_v33 = vmul.f32 %v1769_v47, %v757_v19 }
  0xe9   : > { %v840_v13 = vadd.f32 %v829_v12, %v802_v24  ;;  %v803_v34 = vadd.f32 %v792_v46, %v780_v25  ;;  %v781_v35 = vadd.f32 %v1785_v23, %v769_v22  ;;  %v794_v36 = vmul.f32 %v1772_v48, %v758_v27 }
  0xea   : > { %875 = vst [vmem:[%s1830_s9 + $0x4] sm:$0x1] %v862_v28  ;;  %v854_v39 = vmul.f32 %v1033_v26, %v1778_v6  ;;  %v782_v41 = vadd.f32 %v1785_v23, %v770_v33  ;;  %v832_v42 = vmul.f32 %v1033_v26, %v1775_v50  ;;  %v771_v15 = vmul.f32 %v1769_v47, %v758_v27 }
  0xeb   : > { %v863_v32 = vadd.f32 %v852_v5, %v840_v13  ;;  %v841_v49 = vadd.f32 %v830_v18, %v803_v34  ;;  %v804_v45 = vadd.f32 %v793_v11, %v781_v35  ;;  %v795_v40 = vmul.f32 %v1772_v48, %v759_v44 }
  0xec   : > { %v805_v52 = vadd.f32 %v794_v36, %v782_v41  ;;  %v855_v53 = vmul.f32 %v1034_v38, %v1778_v6  ;;  %v783_v54 = vadd.f32 %v1785_v23, %v771_v15  ;;  %v833_v31 = vmul.f32 %v1034_v38, %v1775_v50 }
  0xed   : > { %876 = vst [vmem:[%s1830_s9 + $0x5] sm:$0x1] %v863_v32  ;;  %v864_v51 = vadd.f32 %v853_v29, %v841_v49  ;;  %v842_v55 = vadd.f32 %v831_v30, %v804_v45  ;;  %v772_v56 = vmul.f32 %v1769_v47, %v759_v44  ;;  %v796_v57 = vmul.f32 %v1772_v48, %v760_v16 }
  0xee   : > { %v843_v58 = vadd.f32 %v832_v42, %v805_v52  ;;  %v806_v0 = vadd.f32 %v795_v40, %v783_v54  ;;  %v856_v59 = vmul.f32 %v1035_v21, %v1778_v6  ;;  %v834_v63 = vmul.f32 %v1035_v21, %v1775_v50 }
  0xef   : > { %877 = vst [vmem:[%s1830_s9 + $0x6] sm:$0x1] %v864_v51  ;;  %v865_v62 = vadd.f32 %v854_v39, %v842_v55  ;;  %v784_v1 = vadd.f32 %v1785_v23, %v772_v56  ;;  %v857_v47 = vmul.f32 %v1036_v37, %v1778_v6 }
  0xf0   : > { %v866_v3 = vadd.f32 %v855_v53, %v843_v58  ;;  %v844_v60 = vadd.f32 %v833_v31, %v806_v0 }
  0xf1   : > { %878 = vst [vmem:[%s1830_s9 + $0x7] sm:$0x1] %v865_v62  ;;  %v807_v4 = vadd.f32 %v796_v57, %v784_v1 }
  0xf2   : > { %879 = vst [vmem:[%s1830_s9 + $0x8] sm:$0x1] %v866_v3  ;;  %v867_v48 = vadd.f32 %v856_v59, %v844_v60 }
  0xf3   : > { %v845_v2 = vadd.f32 %v834_v63, %v807_v4  ;;  %745 = sbr.rel (!%p743_p8) target bundleno = 212 (0xd4), region = 118 }
  0xf4   : > { %880 = vst [vmem:[%s1830_s9 + $0x9] sm:$0x1] %v867_v48 }
  0xf5   : > { %v868_v43 = vadd.f32 %v857_v47, %v845_v2 }
  0xf7   : > { %881 = vst [vmem:[%s1830_s9 + $0xa] sm:$0x1] %v868_v43 }
  0xf8   :  { %1135 = shalt.err (!%p1132_p13)
}
  0xf9   :  { %893 = dma.vmem_to_hbm [thread:$0]  %s888_s10, 1936, %s1896_s7, [#allocation9], %s1178_s3, %s1178_s3, %s1179_s11  }
  0xfa   :  { %1162 = dma.done.wait [#allocation9], 1936  }
  0xfb   :  { %1163 = vsyncadd [#allocation9], 4294965360 }
  0xfc   :  { %897 = vsyncpa [#allocation8], 1 }
  0xfd   :  { %898 = vsyncpa [#allocation9], 1 }
  0xfe   :  { %899 = vsyncpa [#allocation10], 1 }
  0xff   :  { %900 = vsyncpa [#allocation13], 1 }

</bundles_post_ra>
